<compile_context>
chip_gen: v7x
topology: tpu7x:2x2x1
jax: 0.10.0
libtpu: 0.0.40
codegen_flags: <defaults>
</compile_context>

<pallas_src>
import functools

import jax
import jax.numpy as jnp
from jax.experimental import pallas as pl
from jax.experimental.pallas import tpu as pltpu


def _elu(x):
    # ELU(alpha=1), overflow-safe: exp only ever sees non-positive inputs.
    return jnp.where(x > 0.0, x, jnp.exp(jnp.minimum(x, 0.0)) - 1.0)


# ---------------------------------------------------------------------------
# Kernel 1: conv1 + ELU + maxpool(3,1,1) + conv2 + ELU  (one image / grid step)
# ---------------------------------------------------------------------------
def _conv_pool_conv_kernel(x_ref, w1_ref, b1_ref, w2_ref, b2_ref, o_ref,
                           s1_ref, s2_ref, *, H, W, C, K):
    # x_ref : (1, H+2, (W+2)*C) f32  zero-padded input image, cols = w*C + c
    # w1_ref: (9, W*C, W*K)     bf16 block-diag conv1 weights, idx = dh*3+dw
    # b1_ref: (1, W*K)          f32  conv1 bias tiled over w
    # w2_ref: (9, W*K, W*K)     bf16 block-diag conv2 weights
    # b2_ref: (1, W*K)          f32  conv2 bias tiled over w
    # o_ref : (1, H, W*K)       f32  conv2+ELU output, cols = w*K + k (lane-dense)
    # s1/s2 : (H+2, (W+2)*K)    f32  VMEM halo scratch (pool / conv2 inputs)
    WK = W * K
    WC = W * C

    # ---- conv1 (3x3, pad=1) + bias + ELU -----------------------------------
    acc = jnp.zeros((H, WK), jnp.float32)
    for idx in range(9):
        dh, dw = idx // 3, idx % 3
        slab = x_ref[0, dh:dh + H, dw * C:dw * C + WC].astype(jnp.bfloat16)
        acc += jnp.dot(slab, w1_ref[idx], preferred_element_type=jnp.float32)
    a1 = _elu(acc + b1_ref[...])                         # (H, W*K) f32

    # ---- MaxPool2d(3, stride=1, pad=1), -inf padding ------------------------
    s1_ref[...] = jnp.full(s1_ref.shape, -jnp.inf, jnp.float32)
    s1_ref[1:H + 1, K:K + WK] = a1
    pooled = s1_ref[0:H, 0:WK]
    for idx in range(1, 9):
        dh, dw = idx // 3, idx % 3
        pooled = jnp.maximum(pooled, s1_ref[dh:dh + H, dw * K:dw * K + WK])

    # ---- conv2 (3x3, pad=1) + bias + ELU ------------------------------------
    s2_ref[...] = jnp.zeros(s2_ref.shape, jnp.float32)
    s2_ref[1:H + 1, K:K + WK] = pooled
    acc2 = jnp.zeros((H, WK), jnp.float32)
    for idx in range(9):
        dh, dw = idx // 3, idx % 3
        slab = s2_ref[dh:dh + H, dw * K:dw * K + WK].astype(jnp.bfloat16)
        acc2 += jnp.dot(slab, w2_ref[idx], preferred_element_type=jnp.float32)
    o_ref[0] = _elu(acc2 + b2_ref[...])


def conv_pool_conv(x_pad2, bd1, b1_tile, bd2, b2_tile, *, H, W, C, K):
    B = x_pad2.shape[0]
    WK = W * K
    kernel = functools.partial(_conv_pool_conv_kernel, H=H, W=W, C=C, K=K)
    return pl.pallas_call(
        kernel,
        out_shape=jax.ShapeDtypeStruct((B, H, WK), jnp.float32),
        grid=(B,),
        in_specs=[
            pl.BlockSpec((1, H + 2, (W + 2) * C), lambda b: (b, 0, 0)),
            pl.BlockSpec((9, W * C, WK), lambda b: (0, 0, 0)),   # resident
            pl.BlockSpec((1, WK), lambda b: (0, 0)),
            pl.BlockSpec((9, WK, WK), lambda b: (0, 0, 0)),      # resident
            pl.BlockSpec((1, WK), lambda b: (0, 0)),
        ],
        out_specs=pl.BlockSpec((1, H, WK), lambda b: (b, 0, 0)),
        scratch_shapes=[pltpu.VMEM((H + 2, (W + 2) * K), jnp.float32),
                        pltpu.VMEM((H + 2, (W + 2) * K), jnp.float32)],
        compiler_params=pltpu.CompilerParams(
            dimension_semantics=("parallel",)),
    )(x_pad2, bd1, b1_tile, bd2, b2_tile)


# ---------------------------------------------------------------------------
# Kernel 2: fused Linear -> ELU -> Linear -> ELU, tiled over the flat_dim axis
# ---------------------------------------------------------------------------
def _fc_fused_kernel(x_ref, w1_ref, b1_ref, w2_ref, b2_ref, o_ref, acc_ref):
    k = pl.program_id(0)

    @pl.when(k == 0)
    def _():
        acc_ref[...] = jnp.zeros_like(acc_ref)

    acc_ref[...] += jnp.dot(x_ref[...], w1_ref[...],
                            preferred_element_type=jnp.float32)

    @pl.when(k == pl.num_programs(0) - 1)
    def _():
        h = _elu(acc_ref[...] + b1_ref[...]).astype(jnp.bfloat16)
        z = jnp.dot(h, w2_ref[...],
                    preferred_element_type=jnp.float32) + b2_ref[...]
        o_ref[...] = _elu(z)


def fc_fused(flat_bf16, w1, b1, w2, b2, *, tk=512):
    B, flat_dim = flat_bf16.shape
    hidden = w1.shape[1]
    z_dim = w2.shape[1]
    if flat_dim % tk != 0:
        tk = flat_dim  # fallback: single reduction step
    nk = flat_dim // tk
    return pl.pallas_call(
        _fc_fused_kernel,
        out_shape=jax.ShapeDtypeStruct((B, z_dim), jnp.float32),
        grid=(nk,),
        in_specs=[
            pl.BlockSpec((B, tk), lambda k: (0, k)),
            pl.BlockSpec((tk, hidden), lambda k: (k, 0)),
            pl.BlockSpec((1, hidden), lambda k: (0, 0)),
            pl.BlockSpec((hidden, z_dim), lambda k: (0, 0)),
            pl.BlockSpec((1, z_dim), lambda k: (0, 0)),
        ],
        out_specs=pl.BlockSpec((B, z_dim), lambda k: (0, 0)),
        scratch_shapes=[pltpu.VMEM((B, hidden), jnp.float32)],
        compiler_params=pltpu.CompilerParams(
            dimension_semantics=("arbitrary",)),
    )(flat_bf16, w1, b1, w2, b2)


# ---------------------------------------------------------------------------
# One-time parameter preparation (plain JAX; keeps torch layouts at the API)
# ---------------------------------------------------------------------------
def _block_diag_conv_weights(w_oihw, Wdim, dtype=jnp.bfloat16):
    """(Kout, Cin, 3, 3) torch conv weight -> (9, W*Cin, W*Kout) block-diag."""
    Kout, Cin, kh, kw = w_oihw.shape
    w_t = jnp.transpose(w_oihw, (2, 3, 1, 0)).reshape(kh * kw, Cin, Kout)
    eye = jnp.eye(Wdim, dtype=w_oihw.dtype)
    bd = jnp.einsum("wv,ick->iwcvk", eye, w_t)      # (9, W, Cin, W, Kout)
    return bd.reshape(kh * kw, Wdim * Cin, Wdim * Kout).astype(dtype)


def prepare_params(params, *, H, W, C, K, hidden, z_dim):
    # fc1 weight permuted so it consumes the (h, w, k)-ordered flat activation
    # exactly like torch consumes its (k, h, w)-ordered Flatten output.
    w_fc1 = params["w_fc1"]                                   # (hidden, K*H*W)
    w_fc1_perm = (w_fc1.reshape(hidden, K, H, W)
                        .transpose(2, 3, 1, 0)                # (H, W, K, hidden)
                        .reshape(H * W * K, hidden))
    return {
        "bd1": _block_diag_conv_weights(params["w1"], W),
        "b1_tile": jnp.tile(params["b1"], W).reshape(1, W * K).astype(jnp.float32),
        "bd2": _block_diag_conv_weights(params["w2"], W),
        "b2_tile": jnp.tile(params["b2"], W).reshape(1, W * K).astype(jnp.float32),
        "w_fc1": w_fc1_perm.astype(jnp.bfloat16),
        "b_fc1": params["b_fc1"].reshape(1, hidden).astype(jnp.float32),
        "w_fc2": params["w_fc2"].T.astype(jnp.bfloat16),      # (hidden, z)
        "b_fc2": params["b_fc2"].reshape(1, z_dim).astype(jnp.float32),
    }


# ---------------------------------------------------------------------------
# Encoder forward
# ---------------------------------------------------------------------------
def encoder_forward(x_nchw, prepped, *, H, W, C, K):
    B = x_nchw.shape[0]
    x = jnp.transpose(x_nchw, (0, 2, 3, 1))                   # NCHW -> NHWC
    xp = jnp.pad(x, ((0, 0), (1, 1), (1, 1), (0, 0)))         # zero conv halo
    xp2 = xp.reshape(B, H + 2, (W + 2) * C).astype(jnp.float32)

    conv_out = conv_pool_conv(xp2, prepped["bd1"], prepped["b1_tile"],
                              prepped["bd2"], prepped["b2_tile"],
                              H=H, W=W, C=C, K=K)             # (B, H, W*K)

    flat = conv_out.reshape(B, H * W * K).astype(jnp.bfloat16)
    z = fc_fused(flat, prepped["w_fc1"], prepped["b_fc1"],
                 prepped["w_fc2"], prepped["b_fc2"])
    return z


# ---------------------------------------------------------------------------
# Deterministic parameter init + demo run
# ---------------------------------------------------------------------------
def init_params(key, num_channels, num_kernels, kernel_size, in_dim,
                num_hidden, z_dim):
    ks = jax.random.split(key, 8)
    flat_dim = in_dim[0] * in_dim[1] * num_kernels
    scale = 0.1
    return {
        "w1": scale * jax.random.normal(
            ks[0], (num_kernels, num_channels, kernel_size, kernel_size), jnp.float32),
        "b1": scale * jax.random.normal(ks[1], (num_kernels,), jnp.float32),
        "w2": scale * jax.random.normal(
            ks[2], (num_kernels, num_kernels, kernel_size, kernel_size), jnp.float32),
        "b2": scale * jax.random.normal(ks[3], (num_kernels,), jnp.float32),
        "w_fc1": scale * jax.random.normal(ks[4], (num_hidden, flat_dim), jnp.float32),
        "b_fc1": scale * jax.random.normal(ks[5], (num_hidden,), jnp.float32),
        "w_fc2": scale * jax.random.normal(ks[6], (z_dim, num_hidden), jnp.float32),
        "b_fc2": scale * jax.random.normal(ks[7], (z_dim,), jnp.float32),
    }


if __name__ == "__main__":
    # kernel_size must be 3 so padding=1 keeps spatial dims (Flatten->Linear).
    B, num_channels, H, W = 2, 4, 16, 16
    num_kernels, kernel_size = 8, 3
    num_hidden, z_dim = 32, 8
    in_dim = (H, W)

    key = jax.random.PRNGKey(0)
    k_param, k_x = jax.random.split(key)
    params = init_params(k_param, num_channels, num_kernels, kernel_size,
                         in_dim, num_hidden, z_dim)
    x = jax.random.normal(k_x, (B, num_channels, H, W), jnp.float32)

    prepped = prepare_params(params, H=H, W=W, C=num_channels, K=num_kernels,
                             hidden=num_hidden, z_dim=z_dim)

    fwd = jax.jit(functools.partial(encoder_forward, H=H, W=W,
                                    C=num_channels, K=num_kernels))
    z = fwd(x, prepped)
    jax.block_until_ready(z)
    assert z.shape == (B, z_dim), z.shape
    assert jnp.all(jnp.isfinite(z))
    print("KERNEL_OK")
</pallas_src>

<mosaic_0001>
module attributes {stable_mosaic.version = 11 : i64} {
  func.func @_fc_fused_kernel(%arg0: i32, %arg1: memref<2x512xbf16, #tpu.memory_space<vmem>>, %arg2: memref<512x32xbf16, #tpu.memory_space<vmem>>, %arg3: memref<1x32xf32, #tpu.memory_space<vmem>>, %arg4: memref<32x8xbf16, #tpu.memory_space<vmem>>, %arg5: memref<1x8xf32, #tpu.memory_space<vmem>>, %arg6: memref<2x8xf32, #tpu.memory_space<vmem>>, %arg7: memref<2x32xf32, #tpu.memory_space<vmem>>) attributes {dimension_semantics = [#tpu.dimension_semantics<arbitrary>], iteration_bounds = array<i64: 4>, scalar_prefetch = 0 : i64, scratch_operands = 1 : i64, tpu.core_type = #tpu.core_type<tc>, window_params = [{transform_indices = @transform_0, window_bounds = array<i64: 2, 512>}, {transform_indices = @transform_1, window_bounds = array<i64: 512, 32>}, {pipeline_mode = #tpu.pipeline_mode<synchronous>, transform_indices = @transform_2, window_bounds = array<i64: 1, 32>}, {pipeline_mode = #tpu.pipeline_mode<synchronous>, transform_indices = @transform_3, window_bounds = array<i64: 32, 8>}, {pipeline_mode = #tpu.pipeline_mode<synchronous>, transform_indices = @transform_4, window_bounds = array<i64: 1, 8>}, {pipeline_mode = #tpu.pipeline_mode<synchronous>, transform_indices = @transform_5, window_bounds = array<i64: 2, 8>}]} {
    %c0_i32 = arith.constant 0 : i32
    %0 = arith.cmpi eq, %arg0, %c0_i32 : i32
    %1 = arith.extui %0 : i1 to i32
    %c0_i32_0 = arith.constant 0 : i32
    %2 = arith.cmpi ne, %1, %c0_i32_0 : i32
    scf.if %2 {
      %cst_9 = arith.constant 0.000000e+00 : f32
      %12 = vector.broadcast %cst_9 : f32 to vector<2x32xf32>
      %c0_10 = arith.constant 0 : index
      %c0_11 = arith.constant 0 : index
      %13 = vector.load %arg7[%c0_10, %c0_11] : memref<2x32xf32, #tpu.memory_space<vmem>>, vector<2x32xf32>
      tpu.vector_store %arg7[%c0_10, %c0_11], %12 {strides = array<i32>} : memref<2x32xf32, #tpu.memory_space<vmem>>, vector<2x32xf32>,
    } else {
    }
    %c0 = arith.constant 0 : index
    %c0_1 = arith.constant 0 : index
    %3 = vector.load %arg7[%c0, %c0_1] : memref<2x32xf32, #tpu.memory_space<vmem>>, vector<2x32xf32>
    %c0_2 = arith.constant 0 : index
    %c0_3 = arith.constant 0 : index
    %4 = vector.load %arg1[%c0_2, %c0_3] : memref<2x512xbf16, #tpu.memory_space<vmem>>, vector<2x512xbf16>
    %c0_4 = arith.constant 0 : index
    %c0_5 = arith.constant 0 : index
    %5 = vector.load %arg2[%c0_4, %c0_5] : memref<512x32xbf16, #tpu.memory_space<vmem>>, vector<512x32xbf16>
    %cst = arith.constant dense<0.000000e+00> : vector<2x32xf32>
    %6 = tpu.matmul %4, %5, %cst {dimension_numbers = #tpu.dot_dimension_numbers<[1], [0], [0], [1], [0, 0, 1, 1], [], []>} : vector<2x512xbf16>, vector<512x32xbf16>, vector<2x32xf32> -> vector<2x32xf32>
    %7 = arith.addf %3, %6 : vector<2x32xf32>
    %c0_6 = arith.constant 0 : index
    %c0_7 = arith.constant 0 : index
    %8 = vector.load %arg7[%c0_6, %c0_7] : memref<2x32xf32, #tpu.memory_space<vmem>>, vector<2x32xf32>
    tpu.vector_store %arg7[%c0_6, %c0_7], %7 {strides = array<i32>} : memref<2x32xf32, #tpu.memory_space<vmem>>, vector<2x32xf32>,
    %c3_i32 = arith.constant 3 : i32
    %9 = arith.cmpi eq, %arg0, %c3_i32 : i32
    %10 = arith.extui %9 : i1 to i32
    %c0_i32_8 = arith.constant 0 : i32
    %11 = arith.cmpi ne, %10, %c0_i32_8 : i32
    scf.if %11 {
      %c0_9 = arith.constant 0 : index
      %c0_10 = arith.constant 0 : index
      %12 = vector.load %arg7[%c0_9, %c0_10] : memref<2x32xf32, #tpu.memory_space<vmem>>, vector<2x32xf32>
      %c0_11 = arith.constant 0 : index
      %c0_12 = arith.constant 0 : index
      %13 = vector.load %arg3[%c0_11, %c0_12] : memref<1x32xf32, #tpu.memory_space<vmem>>, vector<1x32xf32>
      %14 = vector.broadcast %13 : vector<1x32xf32> to vector<2x32xf32>
      %15 = arith.addf %12, %14 : vector<2x32xf32>
      %cst_13 = arith.constant 0.000000e+00 : f32
      %16 = vector.broadcast %cst_13 : f32 to vector<2x32xf32>
      %17 = arith.cmpf ogt, %15, %16 : vector<2x32xf32>
      %cst_14 = arith.constant 0.000000e+00 : f32
      %18 = vector.broadcast %cst_14 : f32 to vector<2x32xf32>
      %19 = arith.minimumf %15, %18 : vector<2x32xf32>
      %20 = math.exp %19 : vector<2x32xf32>
      %cst_15 = arith.constant 1.000000e+00 : f32
      %21 = vector.broadcast %cst_15 : f32 to vector<2x32xf32>
      %22 = arith.subf %20, %21 : vector<2x32xf32>
      %23 = arith.select %17, %15, %22 : vector<2x32xi1>, vector<2x32xf32>
      %24 = arith.truncf %23 : vector<2x32xf32> to vector<2x32xbf16>
      %c0_16 = arith.constant 0 : index
      %c0_17 = arith.constant 0 : index
      %25 = vector.load %arg4[%c0_16, %c0_17] : memref<32x8xbf16, #tpu.memory_space<vmem>>, vector<32x8xbf16>
      %cst_18 = arith.constant dense<0.000000e+00> : vector<2x8xf32>
      %26 = tpu.matmul %24, %25, %cst_18 {dimension_numbers = #tpu.dot_dimension_numbers<[1], [0], [0], [1], [0, 0, 1, 1], [], []>} : vector<2x32xbf16>, vector<32x8xbf16>, vector<2x8xf32> -> vector<2x8xf32>
      %c0_19 = arith.constant 0 : index
      %c0_20 = arith.constant 0 : index
      %27 = vector.load %arg5[%c0_19, %c0_20] : memref<1x8xf32, #tpu.memory_space<vmem>>, vector<1x8xf32>
      %28 = vector.broadcast %27 : vector<1x8xf32> to vector<2x8xf32>
      %29 = arith.addf %26, %28 : vector<2x8xf32>
      %cst_21 = arith.constant 0.000000e+00 : f32
      %30 = vector.broadcast %cst_21 : f32 to vector<2x8xf32>
      %31 = arith.cmpf ogt, %29, %30 : vector<2x8xf32>
      %cst_22 = arith.constant 0.000000e+00 : f32
      %32 = vector.broadcast %cst_22 : f32 to vector<2x8xf32>
      %33 = arith.minimumf %29, %32 : vector<2x8xf32>
      %34 = math.exp %33 : vector<2x8xf32>
      %cst_23 = arith.constant 1.000000e+00 : f32
      %35 = vector.broadcast %cst_23 : f32 to vector<2x8xf32>
      %36 = arith.subf %34, %35 : vector<2x8xf32>
      %37 = arith.select %31, %29, %36 : vector<2x8xi1>, vector<2x8xf32>
      %c0_24 = arith.constant 0 : index
      %c0_25 = arith.constant 0 : index
      %38 = vector.load %arg6[%c0_24, %c0_25] : memref<2x8xf32, #tpu.memory_space<vmem>>, vector<2x8xf32>
      tpu.vector_store %arg6[%c0_24, %c0_25], %37 {strides = array<i32>} : memref<2x8xf32, #tpu.memory_space<vmem>>, vector<2x8xf32>,
    } else {
    }
    return
  }
  func.func @transform_0(%arg0: i32) -> (i32, i32) {
    %c0_i32 = arith.constant 0 : i32
    %c0_i32_0 = arith.constant 0 : i32
    return %c0_i32, %arg0 : i32, i32
  }
  func.func @transform_1(%arg0: i32) -> (i32, i32) {
    %c0_i32 = arith.constant 0 : i32
    %c0_i32_0 = arith.constant 0 : i32
    return %arg0, %c0_i32 : i32, i32
  }
  func.func @transform_2(%arg0: i32) -> (i32, i32) {
    %c0_i32 = arith.constant 0 : i32
    %c0_i32_0 = arith.constant 0 : i32
    %c0_i32_1 = arith.constant 0 : i32
    return %c0_i32, %c0_i32_0 : i32, i32
  }
  func.func @transform_3(%arg0: i32) -> (i32, i32) {
    %c0_i32 = arith.constant 0 : i32
    %c0_i32_0 = arith.constant 0 : i32
    %c0_i32_1 = arith.constant 0 : i32
    return %c0_i32, %c0_i32_0 : i32, i32
  }
  func.func @transform_4(%arg0: i32) -> (i32, i32) {
    %c0_i32 = arith.constant 0 : i32
    %c0_i32_0 = arith.constant 0 : i32
    %c0_i32_1 = arith.constant 0 : i32
    return %c0_i32, %c0_i32_0 : i32, i32
  }
  func.func @transform_5(%arg0: i32) -> (i32, i32) {
    %c0_i32 = arith.constant 0 : i32
    %c0_i32_0 = arith.constant 0 : i32
    %c0_i32_1 = arith.constant 0 : i32
    return %c0_i32, %c0_i32_0 : i32, i32
  }
}

module attributes {stable_mosaic.version = 11 : i64} {
  func.func @_conv_pool_conv_kernel(%arg0: i32, %arg1: memref<1x18x72xf32, #tpu.memory_space<vmem>>, %arg2: memref<9x64x128xbf16, #tpu.memory_space<vmem>>, %arg3: memref<1x128xf32, #tpu.memory_space<vmem>>, %arg4: memref<9x128x128xbf16, #tpu.memory_space<vmem>>, %arg5: memref<1x128xf32, #tpu.memory_space<vmem>>, %arg6: memref<1x16x128xf32, #tpu.memory_space<vmem>>, %arg7: memref<18x144xf32, #tpu.memory_space<vmem>>, %arg8: memref<18x144xf32, #tpu.memory_space<vmem>>) attributes {dimension_semantics = [#tpu.dimension_semantics<parallel>], iteration_bounds = array<i64: 2>, scalar_prefetch = 0 : i64, scratch_operands = 2 : i64, tpu.core_type = #tpu.core_type<tc>, window_params = [{transform_indices = @transform_0, window_bounds = array<i64: 1, 18, 72>}, {pipeline_mode = #tpu.pipeline_mode<synchronous>, transform_indices = @transform_1, window_bounds = array<i64: 9, 64, 128>}, {pipeline_mode = #tpu.pipeline_mode<synchronous>, transform_indices = @transform_2, window_bounds = array<i64: 1, 128>}, {pipeline_mode = #tpu.pipeline_mode<synchronous>, transform_indices = @transform_3, window_bounds = array<i64: 9, 128, 128>}, {pipeline_mode = #tpu.pipeline_mode<synchronous>, transform_indices = @transform_4, window_bounds = array<i64: 1, 128>}, {transform_indices = @transform_5, window_bounds = array<i64: 1, 16, 128>}]} {
    %cst = arith.constant 0.000000e+00 : f32
    %0 = vector.broadcast %cst : f32 to vector<16x128xf32>
    %c0 = arith.constant 0 : index
    %c0_0 = arith.constant 0 : index
    %c0_1 = arith.constant 0 : index
    %1 = vector.load %arg1[%c0, %c0_0, %c0_1] : memref<1x18x72xf32, #tpu.memory_space<vmem>>, vector<1x16x64xf32>
    %2 = vector.shape_cast %1 : vector<1x16x64xf32> to vector<16x64xf32>
    %3 = arith.truncf %2 : vector<16x64xf32> to vector<16x64xbf16>
    %c0_2 = arith.constant 0 : index
    %c0_3 = arith.constant 0 : index
    %c0_4 = arith.constant 0 : index
    %4 = vector.load %arg2[%c0_2, %c0_3, %c0_4] : memref<9x64x128xbf16, #tpu.memory_space<vmem>>, vector<1x64x128xbf16>
    %5 = vector.shape_cast %4 : vector<1x64x128xbf16> to vector<64x128xbf16>
    %cst_5 = arith.constant dense<0.000000e+00> : vector<16x128xf32>
    %6 = tpu.matmul %3, %5, %cst_5 {dimension_numbers = #tpu.dot_dimension_numbers<[1], [0], [0], [1], [0, 0, 1, 1], [], []>} : vector<16x64xbf16>, vector<64x128xbf16>, vector<16x128xf32> -> vector<16x128xf32>
    %7 = arith.addf %0, %6 : vector<16x128xf32>
    %c0_6 = arith.constant 0 : index
    %c0_7 = arith.constant 0 : index
    %c4 = arith.constant 4 : index
    %8 = vector.load %arg1[%c0_6, %c0_7, %c4] : memref<1x18x72xf32, #tpu.memory_space<vmem>>, vector<1x16x64xf32>
    %9 = vector.shape_cast %8 : vector<1x16x64xf32> to vector<16x64xf32>
    %10 = arith.truncf %9 : vector<16x64xf32> to vector<16x64xbf16>
    %c1 = arith.constant 1 : index
    %c0_8 = arith.constant 0 : index
    %c0_9 = arith.constant 0 : index
    %11 = vector.load %arg2[%c1, %c0_8, %c0_9] : memref<9x64x128xbf16, #tpu.memory_space<vmem>>, vector<1x64x128xbf16>
    %12 = vector.shape_cast %11 : vector<1x64x128xbf16> to vector<64x128xbf16>
    %cst_10 = arith.constant dense<0.000000e+00> : vector<16x128xf32>
    %13 = tpu.matmul %10, %12, %cst_10 {dimension_numbers = #tpu.dot_dimension_numbers<[1], [0], [0], [1], [0, 0, 1, 1], [], []>} : vector<16x64xbf16>, vector<64x128xbf16>, vector<16x128xf32> -> vector<16x128xf32>
    %14 = arith.addf %7, %13 : vector<16x128xf32>
    %c0_11 = arith.constant 0 : index
    %c0_12 = arith.constant 0 : index
    %c8 = arith.constant 8 : index
    %15 = vector.load %arg1[%c0_11, %c0_12, %c8] : memref<1x18x72xf32, #tpu.memory_space<vmem>>, vector<1x16x64xf32>
    %16 = vector.shape_cast %15 : vector<1x16x64xf32> to vector<16x64xf32>
    %17 = arith.truncf %16 : vector<16x64xf32> to vector<16x64xbf16>
    %c2 = arith.constant 2 : index
    %c0_13 = arith.constant 0 : index
    %c0_14 = arith.constant 0 : index
    %18 = vector.load %arg2[%c2, %c0_13, %c0_14] : memref<9x64x128xbf16, #tpu.memory_space<vmem>>, vector<1x64x128xbf16>
    %19 = vector.shape_cast %18 : vector<1x64x128xbf16> to vector<64x128xbf16>
    %cst_15 = arith.constant dense<0.000000e+00> : vector<16x128xf32>
    %20 = tpu.matmul %17, %19, %cst_15 {dimension_numbers = #tpu.dot_dimension_numbers<[1], [0], [0], [1], [0, 0, 1, 1], [], []>} : vector<16x64xbf16>, vector<64x128xbf16>, vector<16x128xf32> -> vector<16x128xf32>
    %21 = arith.addf %14, %20 : vector<16x128xf32>
    %c0_16 = arith.constant 0 : index
    %c1_17 = arith.constant 1 : index
    %c0_18 = arith.constant 0 : index
    %22 = vector.load %arg1[%c0_16, %c1_17, %c0_18] : memref<1x18x72xf32, #tpu.memory_space<vmem>>, vector<1x16x64xf32>
    %23 = vector.shape_cast %22 : vector<1x16x64xf32> to vector<16x64xf32>
    %24 = arith.truncf %23 : vector<16x64xf32> to vector<16x64xbf16>
    %c3 = arith.constant 3 : index
    %c0_19 = arith.constant 0 : index
    %c0_20 = arith.constant 0 : index
    %25 = vector.load %arg2[%c3, %c0_19, %c0_20] : memref<9x64x128xbf16, #tpu.memory_space<vmem>>, vector<1x64x128xbf16>
    %26 = vector.shape_cast %25 : vector<1x64x128xbf16> to vector<64x128xbf16>
    %cst_21 = arith.constant dense<0.000000e+00> : vector<16x128xf32>
    %27 = tpu.matmul %24, %26, %cst_21 {dimension_numbers = #tpu.dot_dimension_numbers<[1], [0], [0], [1], [0, 0, 1, 1], [], []>} : vector<16x64xbf16>, vector<64x128xbf16>, vector<16x128xf32> -> vector<16x128xf32>
    %28 = arith.addf %21, %27 : vector<16x128xf32>
    %c0_22 = arith.constant 0 : index
    %c1_23 = arith.constant 1 : index
    %c4_24 = arith.constant 4 : index
    %29 = vector.load %arg1[%c0_22, %c1_23, %c4_24] : memref<1x18x72xf32, #tpu.memory_space<vmem>>, vector<1x16x64xf32>
    %30 = vector.shape_cast %29 : vector<1x16x64xf32> to vector<16x64xf32>
    %31 = arith.truncf %30 : vector<16x64xf32> to vector<16x64xbf16>
    %c4_25 = arith.constant 4 : index
    %c0_26 = arith.constant 0 : index
    %c0_27 = arith.constant 0 : index
    %32 = vector.load %arg2[%c4_25, %c0_26, %c0_27] : memref<9x64x128xbf16, #tpu.memory_space<vmem>>, vector<1x64x128xbf16>
    %33 = vector.shape_cast %32 : vector<1x64x128xbf16> to vector<64x128xbf16>
    %cst_28 = arith.constant dense<0.000000e+00> : vector<16x128xf32>
    %34 = tpu.matmul %31, %33, %cst_28 {dimension_numbers = #tpu.dot_dimension_numbers<[1], [0], [0], [1], [0, 0, 1, 1], [], []>} : vector<16x64xbf16>, vector<64x128xbf16>, vector<16x128xf32> -> vector<16x128xf32>
    %35 = arith.addf %28, %34 : vector<16x128xf32>
    %c0_29 = arith.constant 0 : index
    %c1_30 = arith.constant 1 : index
    %c8_31 = arith.constant 8 : index
    %36 = vector.load %arg1[%c0_29, %c1_30, %c8_31] : memref<1x18x72xf32, #tpu.memory_space<vmem>>, vector<1x16x64xf32>
    %37 = vector.shape_cast %36 : vector<1x16x64xf32> to vector<16x64xf32>
    %38 = arith.truncf %37 : vector<16x64xf32> to vector<16x64xbf16>
    %c5 = arith.constant 5 : index
    %c0_32 = arith.constant 0 : index
    %c0_33 = arith.constant 0 : index
    %39 = vector.load %arg2[%c5, %c0_32, %c0_33] : memref<9x64x128xbf16, #tpu.memory_space<vmem>>, vector<1x64x128xbf16>
    %40 = vector.shape_cast %39 : vector<1x64x128xbf16> to vector<64x128xbf16>
    %cst_34 = arith.constant dense<0.000000e+00> : vector<16x128xf32>
    %41 = tpu.matmul %38, %40, %cst_34 {dimension_numbers = #tpu.dot_dimension_numbers<[1], [0], [0], [1], [0, 0, 1, 1], [], []>} : vector<16x64xbf16>, vector<64x128xbf16>, vector<16x128xf32> -> vector<16x128xf32>
    %42 = arith.addf %35, %41 : vector<16x128xf32>
    %c0_35 = arith.constant 0 : index
    %c2_36 = arith.constant 2 : index
    %c0_37 = arith.constant 0 : index
    %43 = vector.load %arg1[%c0_35, %c2_36, %c0_37] : memref<1x18x72xf32, #tpu.memory_space<vmem>>, vector<1x16x64xf32>
    %44 = vector.shape_cast %43 : vector<1x16x64xf32> to vector<16x64xf32>
    %45 = arith.truncf %44 : vector<16x64xf32> to vector<16x64xbf16>
    %c6 = arith.constant 6 : index
    %c0_38 = arith.constant 0 : index
    %c0_39 = arith.constant 0 : index
    %46 = vector.load %arg2[%c6, %c0_38, %c0_39] : memref<9x64x128xbf16, #tpu.memory_space<vmem>>, vector<1x64x128xbf16>
    %47 = vector.shape_cast %46 : vector<1x64x128xbf16> to vector<64x128xbf16>
    %cst_40 = arith.constant dense<0.000000e+00> : vector<16x128xf32>
    %48 = tpu.matmul %45, %47, %cst_40 {dimension_numbers = #tpu.dot_dimension_numbers<[1], [0], [0], [1], [0, 0, 1, 1], [], []>} : vector<16x64xbf16>, vector<64x128xbf16>, vector<16x128xf32> -> vector<16x128xf32>
    %49 = arith.addf %42, %48 : vector<16x128xf32>
    %c0_41 = arith.constant 0 : index
    %c2_42 = arith.constant 2 : index
    %c4_43 = arith.constant 4 : index
    %50 = vector.load %arg1[%c0_41, %c2_42, %c4_43] : memref<1x18x72xf32, #tpu.memory_space<vmem>>, vector<1x16x64xf32>
    %51 = vector.shape_cast %50 : vector<1x16x64xf32> to vector<16x64xf32>
    %52 = arith.truncf %51 : vector<16x64xf32> to vector<16x64xbf16>
    %c7 = arith.constant 7 : index
    %c0_44 = arith.constant 0 : index
    %c0_45 = arith.constant 0 : index
    %53 = vector.load %arg2[%c7, %c0_44, %c0_45] : memref<9x64x128xbf16, #tpu.memory_space<vmem>>, vector<1x64x128xbf16>
    %54 = vector.shape_cast %53 : vector<1x64x128xbf16> to vector<64x128xbf16>
    %cst_46 = arith.constant dense<0.000000e+00> : vector<16x128xf32>
    %55 = tpu.matmul %52, %54, %cst_46 {dimension_numbers = #tpu.dot_dimension_numbers<[1], [0], [0], [1], [0, 0, 1, 1], [], []>} : vector<16x64xbf16>, vector<64x128xbf16>, vector<16x128xf32> -> vector<16x128xf32>
    %56 = arith.addf %49, %55 : vector<16x128xf32>
    %c0_47 = arith.constant 0 : index
    %c2_48 = arith.constant 2 : index
    %c8_49 = arith.constant 8 : index
    %57 = vector.load %arg1[%c0_47, %c2_48, %c8_49] : memref<1x18x72xf32, #tpu.memory_space<vmem>>, vector<1x16x64xf32>
    %58 = vector.shape_cast %57 : vector<1x16x64xf32> to vector<16x64xf32>
    %59 = arith.truncf %58 : vector<16x64xf32> to vector<16x64xbf16>
    %c8_50 = arith.constant 8 : index
    %c0_51 = arith.constant 0 : index
    %c0_52 = arith.constant 0 : index
    %60 = vector.load %arg2[%c8_50, %c0_51, %c0_52] : memref<9x64x128xbf16, #tpu.memory_space<vmem>>, vector<1x64x128xbf16>
    %61 = vector.shape_cast %60 : vector<1x64x128xbf16> to vector<64x128xbf16>
    %cst_53 = arith.constant dense<0.000000e+00> : vector<16x128xf32>
    %62 = tpu.matmul %59, %61, %cst_53 {dimension_numbers = #tpu.dot_dimension_numbers<[1], [0], [0], [1], [0, 0, 1, 1], [], []>} : vector<16x64xbf16>, vector<64x128xbf16>, vector<16x128xf32> -> vector<16x128xf32>
    %63 = arith.addf %56, %62 : vector<16x128xf32>
    %c0_54 = arith.constant 0 : index
    %c0_55 = arith.constant 0 : index
    %64 = vector.load %arg3[%c0_54, %c0_55] : memref<1x128xf32, #tpu.memory_space<vmem>>, vector<1x128xf32>
    %65 = vector.broadcast %64 : vector<1x128xf32> to vector<16x128xf32>
    %66 = arith.addf %63, %65 : vector<16x128xf32>
    %cst_56 = arith.constant 0.000000e+00 : f32
    %67 = vector.broadcast %cst_56 : f32 to vector<16x128xf32>
    %68 = arith.cmpf ogt, %66, %67 : vector<16x128xf32>
    %cst_57 = arith.constant 0.000000e+00 : f32
    %69 = vector.broadcast %cst_57 : f32 to vector<16x128xf32>
    %70 = arith.minimumf %66, %69 : vector<16x128xf32>
    %71 = math.exp %70 : vector<16x128xf32>
    %cst_58 = arith.constant 1.000000e+00 : f32
    %72 = vector.broadcast %cst_58 : f32 to vector<16x128xf32>
    %73 = arith.subf %71, %72 : vector<16x128xf32>
    %74 = arith.select %68, %66, %73 : vector<16x128xi1>, vector<16x128xf32>
    %cst_59 = arith.constant 0xFF800000 : f32
    %75 = vector.broadcast %cst_59 : f32 to vector<18x144xf32>
    %c0_60 = arith.constant 0 : index
    %c0_61 = arith.constant 0 : index
    %76 = vector.load %arg7[%c0_60, %c0_61] : memref<18x144xf32, #tpu.memory_space<vmem>>, vector<18x144xf32>
    tpu.vector_store %arg7[%c0_60, %c0_61], %75 {strides = array<i32>} : memref<18x144xf32, #tpu.memory_space<vmem>>, vector<18x144xf32>,
    %c1_62 = arith.constant 1 : index
    %c8_63 = arith.constant 8 : index
    %77 = vector.load %arg7[%c1_62, %c8_63] : memref<18x144xf32, #tpu.memory_space<vmem>>, vector<16x128xf32>
    tpu.vector_store %arg7[%c1_62, %c8_63], %74 {strides = array<i32>} : memref<18x144xf32, #tpu.memory_space<vmem>>, vector<16x128xf32>,
    %c0_64 = arith.constant 0 : index
    %c0_65 = arith.constant 0 : index
    %78 = vector.load %arg7[%c0_64, %c0_65] : memref<18x144xf32, #tpu.memory_space<vmem>>, vector<16x128xf32>
    %c0_66 = arith.constant 0 : index
    %c8_67 = arith.constant 8 : index
    %79 = vector.load %arg7[%c0_66, %c8_67] : memref<18x144xf32, #tpu.memory_space<vmem>>, vector<16x128xf32>
    %80 = arith.maximumf %78, %79 : vector<16x128xf32>
    %c0_68 = arith.constant 0 : index
    %c16 = arith.constant 16 : index
    %81 = vector.load %arg7[%c0_68, %c16] : memref<18x144xf32, #tpu.memory_space<vmem>>, vector<16x128xf32>
    %82 = arith.maximumf %80, %81 : vector<16x128xf32>
    %c1_69 = arith.constant 1 : index
    %c0_70 = arith.constant 0 : index
    %83 = vector.load %arg7[%c1_69, %c0_70] : memref<18x144xf32, #tpu.memory_space<vmem>>, vector<16x128xf32>
    %84 = arith.maximumf %82, %83 : vector<16x128xf32>
    %c1_71 = arith.constant 1 : index
    %c8_72 = arith.constant 8 : index
    %85 = vector.load %arg7[%c1_71, %c8_72] : memref<18x144xf32, #tpu.memory_space<vmem>>, vector<16x128xf32>
    %86 = arith.maximumf %84, %85 : vector<16x128xf32>
    %c1_73 = arith.constant 1 : index
    %c16_74 = arith.constant 16 : index
    %87 = vector.load %arg7[%c1_73, %c16_74] : memref<18x144xf32, #tpu.memory_space<vmem>>, vector<16x128xf32>
    %88 = arith.maximumf %86, %87 : vector<16x128xf32>
    %c2_75 = arith.constant 2 : index
    %c0_76 = arith.constant 0 : index
    %89 = vector.load %arg7[%c2_75, %c0_76] : memref<18x144xf32, #tpu.memory_space<vmem>>, vector<16x128xf32>
    %90 = arith.maximumf %88, %89 : vector<16x128xf32>
    %c2_77 = arith.constant 2 : index
    %c8_78 = arith.constant 8 : index
    %91 = vector.load %arg7[%c2_77, %c8_78] : memref<18x144xf32, #tpu.memory_space<vmem>>, vector<16x128xf32>
    %92 = arith.maximumf %90, %91 : vector<16x128xf32>
    %c2_79 = arith.constant 2 : index
    %c16_80 = arith.constant 16 : index
    %93 = vector.load %arg7[%c2_79, %c16_80] : memref<18x144xf32, #tpu.memory_space<vmem>>, vector<16x128xf32>
    %94 = arith.maximumf %92, %93 : vector<16x128xf32>
    %cst_81 = arith.constant 0.000000e+00 : f32
    %95 = vector.broadcast %cst_81 : f32 to vector<18x144xf32>
    %c0_82 = arith.constant 0 : index
    %c0_83 = arith.constant 0 : index
    %96 = vector.load %arg8[%c0_82, %c0_83] : memref<18x144xf32, #tpu.memory_space<vmem>>, vector<18x144xf32>
    tpu.vector_store %arg8[%c0_82, %c0_83], %95 {strides = array<i32>} : memref<18x144xf32, #tpu.memory_space<vmem>>, vector<18x144xf32>,
    %c1_84 = arith.constant 1 : index
    %c8_85 = arith.constant 8 : index
    %97 = vector.load %arg8[%c1_84, %c8_85] : memref<18x144xf32, #tpu.memory_space<vmem>>, vector<16x128xf32>
    tpu.vector_store %arg8[%c1_84, %c8_85], %94 {strides = array<i32>} : memref<18x144xf32, #tpu.memory_space<vmem>>, vector<16x128xf32>,
    %cst_86 = arith.constant 0.000000e+00 : f32
    %98 = vector.broadcast %cst_86 : f32 to vector<16x128xf32>
    %c0_87 = arith.constant 0 : index
    %c0_88 = arith.constant 0 : index
    %99 = vector.load %arg8[%c0_87, %c0_88] : memref<18x144xf32, #tpu.memory_space<vmem>>, vector<16x128xf32>
    %100 = arith.truncf %99 : vector<16x128xf32> to vector<16x128xbf16>
    %c0_89 = arith.constant 0 : index
    %c0_90 = arith.constant 0 : index
    %c0_91 = arith.constant 0 : index
    %101 = vector.load %arg4[%c0_89, %c0_90, %c0_91] : memref<9x128x128xbf16, #tpu.memory_space<vmem>>, vector<1x128x128xbf16>
    %102 = vector.shape_cast %101 : vector<1x128x128xbf16> to vector<128x128xbf16>
    %cst_92 = arith.constant dense<0.000000e+00> : vector<16x128xf32>
    %103 = tpu.matmul %100, %102, %cst_92 {dimension_numbers = #tpu.dot_dimension_numbers<[1], [0], [0], [1], [0, 0, 1, 1], [], []>} : vector<16x128xbf16>, vector<128x128xbf16>, vector<16x128xf32> -> vector<16x128xf32>
    %104 = arith.addf %98, %103 : vector<16x128xf32>
    %c0_93 = arith.constant 0 : index
    %c8_94 = arith.constant 8 : index
    %105 = vector.load %arg8[%c0_93, %c8_94] : memref<18x144xf32, #tpu.memory_space<vmem>>, vector<16x128xf32>
    %106 = arith.truncf %105 : vector<16x128xf32> to vector<16x128xbf16>
    %c1_95 = arith.constant 1 : index
    %c0_96 = arith.constant 0 : index
    %c0_97 = arith.constant 0 : index
    %107 = vector.load %arg4[%c1_95, %c0_96, %c0_97] : memref<9x128x128xbf16, #tpu.memory_space<vmem>>, vector<1x128x128xbf16>
    %108 = vector.shape_cast %107 : vector<1x128x128xbf16> to vector<128x128xbf16>
    %cst_98 = arith.constant dense<0.000000e+00> : vector<16x128xf32>
    %109 = tpu.matmul %106, %108, %cst_98 {dimension_numbers = #tpu.dot_dimension_numbers<[1], [0], [0], [1], [0, 0, 1, 1], [], []>} : vector<16x128xbf16>, vector<128x128xbf16>, vector<16x128xf32> -> vector<16x128xf32>
    %110 = arith.addf %104, %109 : vector<16x128xf32>
    %c0_99 = arith.constant 0 : index
    %c16_100 = arith.constant 16 : index
    %111 = vector.load %arg8[%c0_99, %c16_100] : memref<18x144xf32, #tpu.memory_space<vmem>>, vector<16x128xf32>
    %112 = arith.truncf %111 : vector<16x128xf32> to vector<16x128xbf16>
    %c2_101 = arith.constant 2 : index
    %c0_102 = arith.constant 0 : index
    %c0_103 = arith.constant 0 : index
    %113 = vector.load %arg4[%c2_101, %c0_102, %c0_103] : memref<9x128x128xbf16, #tpu.memory_space<vmem>>, vector<1x128x128xbf16>
    %114 = vector.shape_cast %113 : vector<1x128x128xbf16> to vector<128x128xbf16>
    %cst_104 = arith.constant dense<0.000000e+00> : vector<16x128xf32>
    %115 = tpu.matmul %112, %114, %cst_104 {dimension_numbers = #tpu.dot_dimension_numbers<[1], [0], [0], [1], [0, 0, 1, 1], [], []>} : vector<16x128xbf16>, vector<128x128xbf16>, vector<16x128xf32> -> vector<16x128xf32>
    %116 = arith.addf %110, %115 : vector<16x128xf32>
    %c1_105 = arith.constant 1 : index
    %c0_106 = arith.constant 0 : index
    %117 = vector.load %arg8[%c1_105, %c0_106] : memref<18x144xf32, #tpu.memory_space<vmem>>, vector<16x128xf32>
    %118 = arith.truncf %117 : vector<16x128xf32> to vector<16x128xbf16>
    %c3_107 = arith.constant 3 : index
    %c0_108 = arith.constant 0 : index
    %c0_109 = arith.constant 0 : index
    %119 = vector.load %arg4[%c3_107, %c0_108, %c0_109] : memref<9x128x128xbf16, #tpu.memory_space<vmem>>, vector<1x128x128xbf16>
    %120 = vector.shape_cast %119 : vector<1x128x128xbf16> to vector<128x128xbf16>
    %cst_110 = arith.constant dense<0.000000e+00> : vector<16x128xf32>
    %121 = tpu.matmul %118, %120, %cst_110 {dimension_numbers = #tpu.dot_dimension_numbers<[1], [0], [0], [1], [0, 0, 1, 1], [], []>} : vector<16x128xbf16>, vector<128x128xbf16>, vector<16x128xf32> -> vector<16x128xf32>
    %122 = arith.addf %116, %121 : vector<16x128xf32>
    %c1_111 = arith.constant 1 : index
    %c8_112 = arith.constant 8 : index
    %123 = vector.load %arg8[%c1_111, %c8_112] : memref<18x144xf32, #tpu.memory_space<vmem>>, vector<16x128xf32>
    %124 = arith.truncf %123 : vector<16x128xf32> to vector<16x128xbf16>
    %c4_113 = arith.constant 4 : index
    %c0_114 = arith.constant 0 : index
    %c0_115 = arith.constant 0 : index
    %125 = vector.load %arg4[%c4_113, %c0_114, %c0_115] : memref<9x128x128xbf16, #tpu.memory_space<vmem>>, vector<1x128x128xbf16>
    %126 = vector.shape_cast %125 : vector<1x128x128xbf16> to vector<128x128xbf16>
    %cst_116 = arith.constant dense<0.000000e+00> : vector<16x128xf32>
    %127 = tpu.matmul %124, %126, %cst_116 {dimension_numbers = #tpu.dot_dimension_numbers<[1], [0], [0], [1], [0, 0, 1, 1], [], []>} : vector<16x128xbf16>, vector<128x128xbf16>, vector<16x128xf32> -> vector<16x128xf32>
    %128 = arith.addf %122, %127 : vector<16x128xf32>
    %c1_117 = arith.constant 1 : index
    %c16_118 = arith.constant 16 : index
    %129 = vector.load %arg8[%c1_117, %c16_118] : memref<18x144xf32, #tpu.memory_space<vmem>>, vector<16x128xf32>
    %130 = arith.truncf %129 : vector<16x128xf32> to vector<16x128xbf16>
    %c5_119 = arith.constant 5 : index
    %c0_120 = arith.constant 0 : index
    %c0_121 = arith.constant 0 : index
    %131 = vector.load %arg4[%c5_119, %c0_120, %c0_121] : memref<9x128x128xbf16, #tpu.memory_space<vmem>>, vector<1x128x128xbf16>
    %132 = vector.shape_cast %131 : vector<1x128x128xbf16> to vector<128x128xbf16>
    %cst_122 = arith.constant dense<0.000000e+00> : vector<16x128xf32>
    %133 = tpu.matmul %130, %132, %cst_122 {dimension_numbers = #tpu.dot_dimension_numbers<[1], [0], [0], [1], [0, 0, 1, 1], [], []>} : vector<16x128xbf16>, vector<128x128xbf16>, vector<16x128xf32> -> vector<16x128xf32>
    %134 = arith.addf %128, %133 : vector<16x128xf32>
    %c2_123 = arith.constant 2 : index
    %c0_124 = arith.constant 0 : index
    %135 = vector.load %arg8[%c2_123, %c0_124] : memref<18x144xf32, #tpu.memory_space<vmem>>, vector<16x128xf32>
    %136 = arith.truncf %135 : vector<16x128xf32> to vector<16x128xbf16>
    %c6_125 = arith.constant 6 : index
    %c0_126 = arith.constant 0 : index
    %c0_127 = arith.constant 0 : index
    %137 = vector.load %arg4[%c6_125, %c0_126, %c0_127] : memref<9x128x128xbf16, #tpu.memory_space<vmem>>, vector<1x128x128xbf16>
    %138 = vector.shape_cast %137 : vector<1x128x128xbf16> to vector<128x128xbf16>
    %cst_128 = arith.constant dense<0.000000e+00> : vector<16x128xf32>
    %139 = tpu.matmul %136, %138, %cst_128 {dimension_numbers = #tpu.dot_dimension_numbers<[1], [0], [0], [1], [0, 0, 1, 1], [], []>} : vector<16x128xbf16>, vector<128x128xbf16>, vector<16x128xf32> -> vector<16x128xf32>
    %140 = arith.addf %134, %139 : vector<16x128xf32>
    %c2_129 = arith.constant 2 : index
    %c8_130 = arith.constant 8 : index
    %141 = vector.load %arg8[%c2_129, %c8_130] : memref<18x144xf32, #tpu.memory_space<vmem>>, vector<16x128xf32>
    %142 = arith.truncf %141 : vector<16x128xf32> to vector<16x128xbf16>
    %c7_131 = arith.constant 7 : index
    %c0_132 = arith.constant 0 : index
    %c0_133 = arith.constant 0 : index
    %143 = vector.load %arg4[%c7_131, %c0_132, %c0_133] : memref<9x128x128xbf16, #tpu.memory_space<vmem>>, vector<1x128x128xbf16>
    %144 = vector.shape_cast %143 : vector<1x128x128xbf16> to vector<128x128xbf16>
    %cst_134 = arith.constant dense<0.000000e+00> : vector<16x128xf32>
    %145 = tpu.matmul %142, %144, %cst_134 {dimension_numbers = #tpu.dot_dimension_numbers<[1], [0], [0], [1], [0, 0, 1, 1], [], []>} : vector<16x128xbf16>, vector<128x128xbf16>, vector<16x128xf32> -> vector<16x128xf32>
    %146 = arith.addf %140, %145 : vector<16x128xf32>
    %c2_135 = arith.constant 2 : index
    %c16_136 = arith.constant 16 : index
    %147 = vector.load %arg8[%c2_135, %c16_136] : memref<18x144xf32, #tpu.memory_space<vmem>>, vector<16x128xf32>
    %148 = arith.truncf %147 : vector<16x128xf32> to vector<16x128xbf16>
    %c8_137 = arith.constant 8 : index
    %c0_138 = arith.constant 0 : index
    %c0_139 = arith.constant 0 : index
    %149 = vector.load %arg4[%c8_137, %c0_138, %c0_139] : memref<9x128x128xbf16, #tpu.memory_space<vmem>>, vector<1x128x128xbf16>
    %150 = vector.shape_cast %149 : vector<1x128x128xbf16> to vector<128x128xbf16>
    %cst_140 = arith.constant dense<0.000000e+00> : vector<16x128xf32>
    %151 = tpu.matmul %148, %150, %cst_140 {dimension_numbers = #tpu.dot_dimension_numbers<[1], [0], [0], [1], [0, 0, 1, 1], [], []>} : vector<16x128xbf16>, vector<128x128xbf16>, vector<16x128xf32> -> vector<16x128xf32>
    %152 = arith.addf %146, %151 : vector<16x128xf32>
    %c0_141 = arith.constant 0 : index
    %c0_142 = arith.constant 0 : index
    %153 = vector.load %arg5[%c0_141, %c0_142] : memref<1x128xf32, #tpu.memory_space<vmem>>, vector<1x128xf32>
    %154 = vector.broadcast %153 : vector<1x128xf32> to vector<16x128xf32>
    %155 = arith.addf %152, %154 : vector<16x128xf32>
    %cst_143 = arith.constant 0.000000e+00 : f32
    %156 = vector.broadcast %cst_143 : f32 to vector<16x128xf32>
    %157 = arith.cmpf ogt, %155, %156 : vector<16x128xf32>
    %cst_144 = arith.constant 0.000000e+00 : f32
    %158 = vector.broadcast %cst_144 : f32 to vector<16x128xf32>
    %159 = arith.minimumf %155, %158 : vector<16x128xf32>
    %160 = math.exp %159 : vector<16x128xf32>
    %cst_145 = arith.constant 1.000000e+00 : f32
    %161 = vector.broadcast %cst_145 : f32 to vector<16x128xf32>
    %162 = arith.subf %160, %161 : vector<16x128xf32>
    %163 = arith.select %157, %155, %162 : vector<16x128xi1>, vector<16x128xf32>
    %c0_146 = arith.constant 0 : index
    %c0_147 = arith.constant 0 : index
    %c0_148 = arith.constant 0 : index
    %164 = vector.load %arg6[%c0_146, %c0_147, %c0_148] : memref<1x16x128xf32, #tpu.memory_space<vmem>>, vector<1x16x128xf32>
    %165 = vector.shape_cast %164 : vector<1x16x128xf32> to vector<16x128xf32>
    %166 = vector.shape_cast %163 : vector<16x128xf32> to vector<1x16x128xf32>
    tpu.vector_store %arg6[%c0_146, %c0_147, %c0_148], %166 {strides = array<i32>} : memref<1x16x128xf32, #tpu.memory_space<vmem>>, vector<1x16x128xf32>,
    return
  }
  func.func @transform_0(%arg0: i32) -> (i32, i32, i32) {
    %c0_i32 = arith.constant 0 : i32
    %c0_i32_0 = arith.constant 0 : i32
    %c0_i32_1 = arith.constant 0 : i32
    return %arg0, %c0_i32, %c0_i32_0 : i32, i32, i32
  }
  func.func @transform_1(%arg0: i32) -> (i32, i32, i32) {
    %c0_i32 = arith.constant 0 : i32
    %c0_i32_0 = arith.constant 0 : i32
    %c0_i32_1 = arith.constant 0 : i32
    %c0_i32_2 = arith.constant 0 : i32
    return %c0_i32, %c0_i32_0, %c0_i32_1 : i32, i32, i32
  }
  func.func @transform_2(%arg0: i32) -> (i32, i32) {
    %c0_i32 = arith.constant 0 : i32
    %c0_i32_0 = arith.constant 0 : i32
    %c0_i32_1 = arith.constant 0 : i32
    return %c0_i32, %c0_i32_0 : i32, i32
  }
  func.func @transform_3(%arg0: i32) -> (i32, i32, i32) {
    %c0_i32 = arith.constant 0 : i32
    %c0_i32_0 = arith.constant 0 : i32
    %c0_i32_1 = arith.constant 0 : i32
    %c0_i32_2 = arith.constant 0 : i32
    return %c0_i32, %c0_i32_0, %c0_i32_1 : i32, i32, i32
  }
  func.func @transform_4(%arg0: i32) -> (i32, i32) {
    %c0_i32 = arith.constant 0 : i32
    %c0_i32_0 = arith.constant 0 : i32
    %c0_i32_1 = arith.constant 0 : i32
    return %c0_i32, %c0_i32_0 : i32, i32
  }
  func.func @transform_5(%arg0: i32) -> (i32, i32, i32) {
    %c0_i32 = arith.constant 0 : i32
    %c0_i32_0 = arith.constant 0 : i32
    %c0_i32_1 = arith.constant 0 : i32
    return %arg0, %c0_i32, %c0_i32_0 : i32, i32, i32
  }
}

</mosaic_0001>

<bundles_post_ra>
// kernel: encoder_forward.3
= control target key start
LH: loop header
LB: loop body
LE: loop exit
PB: predicated region body
PF: predicated region fallthrough
CT: control target
= control target key end

     0   :  { %10 = vsyncpa [#allocation4], 0  ;;  %s997_s18 = smov 0   ;;  %s1097_s0 = inlined_call_operand.vmem [shape: bf16[2,2048], index: 0, kind: input, shape index: {}]   ;;  %s1098_s1 = inlined_call_operand.vmem [shape: bf16[2048,32], index: 1, kind: input, shape index: {}]   ;;  %s1099_s2 = inlined_call_operand.vmem [shape: f32[1,32], index: 2, kind: input, shape index: {}]   ;;  %s1100_s3 = inlined_call_operand.vmem [shape: bf16[32,8], index: 3, kind: input, shape index: {}]   ;;  %s1101_s4 = inlined_call_operand.vmem [shape: f32[1,8], index: 4, kind: input, shape index: {}]   ;;  %s1102_s5 = inlined_call_operand.hbm [shape: f32[2,8], index: 5, kind: output, shape index: {}]  }
   0x1 LB: > { %s1003_s19 = sadd.s32 4294967295, %s960_s18   ;;  %p762_p0 = scmp.ge.s32.totalorder %s960_s18, 1  ;;  %s960_s18 = sphi %s997_s18, %s16_s18  }
   0x2   : > { %p194_p1 = scmp.lt.s32.totalorder %s960_s18, 5 }
   0x4   : > { %p195_p2 = pnand %p762_p0, %p194_p1 }
   0x5   : > { %s763_s20 = sshll.u32 (!%p195_p2), %s1003_s19, 2  ;;  %s764_s21 = sshll.u32 (!%p195_p2), %s1003_s19, 6 }
   0x6   : > { %198 = sbr.rel (%p195_p2) target bundleno = 564 (0x234), region = 40  ;;  %p222_p3 = scmp.lt.s32.totalorder (!%p195_p2), %s763_s20, 15 }
   0x7   : > { %p227_p4 = scmp.lt.s32.totalorder (!%p195_p2), %s764_s21, 255  ;;  %p766_p5 = scmp.ne.s32.totalorder (!%p195_p2), %s1003_s19, 0 }
   0xd   : > { %s1104_s20 = smov (!%p222_p3, %s763_s20), 15  ;;  %s1106_s21 = smov (!%p227_p4, %s764_s21), 255 }
   0xe   : > { %s224_s24 = scalar_lea.vmem %s1097_s0, %s1104_s20  ;;  %s765_s25 = sshll.u32 %s1106_s21, 2  ;;  %vm237_vm0 = vcmask (!%p766_p5), 254976   ;;  %v962_v0 = vmov (!%p766_p5), 0.0  }
   0xf   : > { %s1018_s28 = scalar_lea.vmem %s1098_s1, %s765_s25  ;;  %236 = sbr.rel (%p766_p5) target bundleno = 22 (0x16), region = 44  ;;  %238 = vst.msk [vmem:[#allocation2] sm:$0x3] (!%p766_p5), %vm237_vm0, %v962_v0 }
  0x16 PF: > { %v886_v1 = vld [vmem:[%s1018_s28 + $0x40] sm:$0xff]   ;;  %v890_v5 = vld [vmem:[%s1018_s28 + $0x48] sm:$0xff]   ;;  %v894_v9 = vld [vmem:[%s1018_s28 + $0x50] sm:$0xff]   ;;  %v317_v31 = vlaneseq  ;;  %v963_v35 = vmov 1966171168   ;;  %vm607_vm1 = vcmask 254976  }
  0x17   : > { %v887_v2 = vld [vmem:[%s1018_s28 + $0xc0] sm:$0xff]   ;;  %812 = vmatprep.subr.bf16.mxu0 %v886_v1  ;;  %v891_v6 = vld [vmem:[%s1018_s28 + $0xc8] sm:$0xff]   ;;  %v895_v10 = vld [vmem:[%s1018_s28 + $0xd0] sm:$0xff]   ;;  %v315_v36 = vunpack.c.l.s4 %v963_v35  ;;  %p800_p6 = scmp.ne.s32.totalorder %s1003_s19, 3 }
  0x18   : > { %v888_v3 = vld [vmem:[%s1018_s28] sm:$0xff]   ;;  %834 = vmatprep.subr.bf16.mxu1 %v887_v2  ;;  %v892_v7 = vld [vmem:[%s1018_s28 + $0x8] sm:$0xff]   ;;  %v896_v11 = vld [vmem:[%s1018_s28 + $0x10] sm:$0xff]   ;;  %v318_v37 = vshrl.u32 %v317_v31, 7  ;;  %v964_v59 = vmov (!%p800_p6), 0.0   ;;  %vm965_vm2 = vmmov (!%p800_p6), 0  }
  0x19   : > { %v889_v4 = vld [vmem:[%s1018_s28 + $0x80] sm:$0xff]   ;;  %813 = vmatpush3.bf16.msra.mxu0 %v888_v3  ;;  %v893_v8 = vld [vmem:[%s1018_s28 + $0x88] sm:$0xff]   ;;  %v897_v12 = vld [vmem:[%s1018_s28 + $0x90] sm:$0xff]   ;;  %v316_v39 = vunpack.c.0.s8 %v315_v36  ;;  %vm652_vm4 = vcmask (!%p800_p6), 261120   ;;  %vm702_vm5 = vcmask (!%p800_p6), 58368  }
  0x1a   : > { %835 = vmatpush3.bf16.msra.mxu1 %v889_v4  ;;  %814 = vmatprep.subr.bf16.mxu0 %v890_v5  ;;  %v898_v13 = vld [vmem:[%s1018_s28 + $0x58] sm:$0xff]   ;;  %v902_v17 = vld [vmem:[%s1018_s28 + $0x60] sm:$0xff]   ;;  %v906_v21 = vld [vmem:[%s1018_s28 + $0x68] sm:$0xff]  }
  0x1b   : > { %836 = vmatprep.subr.bf16.mxu1 %v891_v6  ;;  %v899_v14 = vld [vmem:[%s1018_s28 + $0xd8] sm:$0xff]   ;;  %v903_v18 = vld [vmem:[%s1018_s28 + $0xe0] sm:$0xff]   ;;  %v907_v22 = vld [vmem:[%s1018_s28 + $0xe8] sm:$0xff]   ;;  %v319_v40 = vsub.s32 %v316_v39, %v318_v37 }
  0x1c   : > { %v900_v15 = vld [vmem:[%s1018_s28 + $0x18] sm:$0xff]   ;;  %v904_v19 = vld [vmem:[%s1018_s28 + $0x20] sm:$0xff]   ;;  %v908_v23 = vld [vmem:[%s1018_s28 + $0x28] sm:$0xff]  }
  0x1d   : > { %815 = vmatpush3.bf16.msra.mxu0 %v892_v7  ;;  %v901_v16 = vld [vmem:[%s1018_s28 + $0x98] sm:$0xff]   ;;  %v905_v20 = vld [vmem:[%s1018_s28 + $0xa0] sm:$0xff]   ;;  %v909_v24 = vld [vmem:[%s1018_s28 + $0xa8] sm:$0xff]  }
  0x1e   : > { %837 = vmatpush3.bf16.msra.mxu1 %v893_v8  ;;  %816 = vmatprep.subr.bf16.mxu0 %v894_v9  ;;  %v910_v25 = vld [vmem:[%s1018_s28 + $0x70] sm:$0xff]   ;;  %v914_v29 = vld [vmem:[%s1018_s28 + $0x78] sm:$0xff]   ;;  %v767_v34 = vld.sshfl [vmem:[%s224_s24] sm:$0x33 pattern:$0x75316420] }
  0x1f   : > { %838 = vmatprep.subr.bf16.mxu1 %v895_v10  ;;  %v911_v26 = vld [vmem:[%s1018_s28 + $0xf0] sm:$0xff]   ;;  %v915_v30 = vld [vmem:[%s1018_s28 + $0xf8] sm:$0xff]   ;;  %v313_v38 = vcombine.high %v767_v34, %v767_v34  ;;  %v320_v42 = vrot.slane %v767_v34, %v319_v40  ;;  %v239_v54 = vld [vmem:[#allocation2] sm:$0x3] }
  0x20   : > { %v912_v27 = vld [vmem:[%s1018_s28 + $0x30] sm:$0xff]   ;;  %v916_v32 = vld [vmem:[%s1018_s28 + $0x38] sm:$0xff]   ;;  %v918_v58 = vld [vmem:[%s1100_s3] sm:$0xff] (!%p800_p6)  }
  0x21   : > { %817 = vmatpush3.bf16.msra.mxu0 %v896_v11  ;;  %v913_v28 = vld [vmem:[%s1018_s28 + $0xb0] sm:$0xff]   ;;  %v917_v33 = vld [vmem:[%s1018_s28 + $0xb8] sm:$0xff]   ;;  %v327_v41 = vrot.slane %v313_v38, %v319_v40  ;;  %v328_v44 = vcombine.high %v320_v42, %v320_v42  ;;  %v919_v60 = vld [vmem:[%s1100_s3 + $0x8] sm:$0xff] (!%p800_p6)  }
  0x22   : > { %839 = vmatpush3.bf16.msra.mxu1 %v897_v12  ;;  %818 = vmatprep.subr.bf16.mxu0 %v898_v13  ;;  %v801_v62 = vld [vmem:[%s1099_s2] ss:$0 sm:$0xff] (!%p800_p6) }
  0x23   : > { %840 = vmatprep.subr.bf16.mxu1 %v899_v14  ;;  %558 = vmatprep.mubr.bf16.mxu0 %v327_v41  ;;  %v329_v43 = vcombine.high %v327_v41, %v327_v41  ;;  %v803_v6 = vld [vmem:[%s1101_s4] ss:$0 sm:$0xff] (!%p800_p6) }
  0x25   : > { %819 = vmatpush3.bf16.msra.mxu0 %v900_v15  ;;  %598 = vmatprep.mubr.bf16.mxu1 %v329_v43 }
  0x26   : > { %841 = vmatpush3.bf16.msra.mxu1 %v901_v16  ;;  %820 = vmatprep.subr.bf16.mxu0 %v902_v17 }
  0x27   : > { %842 = vmatprep.subr.bf16.mxu1 %v903_v18 }
  0x29   : > { %821 = vmatpush3.bf16.msra.mxu0 %v904_v19 }
  0x2a   : > { %843 = vmatpush3.bf16.msra.mxu1 %v905_v20  ;;  %822 = vmatprep.subr.bf16.mxu0 %v906_v21 }
  0x2b   : > { %844 = vmatprep.subr.bf16.mxu1 %v907_v22 }
  0x2d   : > { %823 = vmatpush3.bf16.msra.mxu0 %v908_v23 }
  0x2e   : > { %845 = vmatpush3.bf16.msra.mxu1 %v909_v24  ;;  %824 = vmatprep.subr.bf16.mxu0 %v910_v25 }
  0x2f   : > { %846 = vmatprep.subr.bf16.mxu1 %v911_v26 }
  0x31   : > { %825 = vmatpush3.bf16.msra.mxu0 %v912_v27 }
  0x32   : > { %847 = vmatpush3.bf16.msra.mxu1 %v913_v28  ;;  %826 = vmatprep.subr.bf16.mxu0 %v914_v29 }
  0x33   : > { %848 = vmatprep.subr.bf16.mxu1 %v915_v30 }
  0x35   : > { %827 = vmatpush3.bf16.msra.mxu0 %v916_v32 }
  0x36   : > { %849 = vmatpush3.bf16.msra.mxu1 %v917_v33  ;;  %859 = vmatprep.subr.bf16.mxu0 (!%p800_p6), %v964_v59 }
  0x38   : > { %559 = vmatmul.mubr.bf16.vlgmr.msra.gmra.mrb[0].mxu0 %v320_v42 }
  0x39   : > { %599 = vmatmul.mubr.bf16.vlgmr.msra.gmra.mrb[0].mxu1 %v328_v44  ;;  %860 = vmatpush3.bf16.msra.mxu0 (!%p800_p6), %v918_v58 }
  0x3a   : > { %863 = vmatprep.mubr.msk.bf16.mxu0 (!%p800_p6), %vm965_vm2, %v964_v59  ;;  %861 = vmatprep.subr.bf16.mxu0 (!%p800_p6), %v964_v59 }
  0x3d   : > { %862 = vmatpush3.bf16.msra.mxu0 (!%p800_p6), %v919_v60 }
 0x10b   : > { %v828_v45 = vpop.f32.mrb[0].mxu0 }
 0x10c   : > { %v829_v46 = vpop.f32.mrb[1].mxu0  ;;  %v850_v47 = vpop.f32.mrb[0].mxu1 }
 0x10d   : > { %v830_v48 = vadd.f32 %v829_v46, %v828_v45  ;;  %v831_v49 = vpop.f32.mrb[2].mxu0  ;;  %v851_v50 = vpop.f32.mrb[1].mxu1 }
 0x10e   : > { %v832_v51 = vpop.f32.mrb[3].mxu0  ;;  %v852_v52 = vadd.f32 %v851_v50, %v850_v47  ;;  %v853_v53 = vpop.f32.mrb[2].mxu1  ;;  %612 = sbr.rel (%p800_p6) target bundleno = 539 (0x21b), region = 48 }
 0x10f   : > { %v854_v55 = vpop.f32.mrb[3].mxu1 }
 0x110   : > { %v601_v56 = vadd.f32 %v852_v52, %v830_v48 }
 0x112   : > { %v606_v57 = vadd.f32 %v601_v56, %v239_v54 }
 0x114   : > { %608 = vst.msk [vmem:[#allocation2] sm:$0x3] %vm607_vm1, %v606_v57 }
 0x11b   : > { %v613_v61 = vld [vmem:[#allocation2] sm:$0x3] }
 0x11c   : > { %v621_v63 = vadd.f32 %v801_v62, %v613_v61 }
 0x11e   : > { %v623_v0 = vmin.f32 %v621_v63, 0.0  ;;  %vm622_vm3 = vcmp.gt.f32.partialorder %v621_v63, 0.0 }
 0x120   : > { %v624_v1 = vmul.f32 1.442695, %v623_v0 }
 0x122   : > { %920 = vpow2.f32 %v624_v1 }
 0x12c   : > { %v921_v2 = vpop.eup %920 }
 0x12d   : > { %v802_v3 = vadd.f32 -1.0, %v921_v2 }
 0x12f   : > { %v627_v4 = vsel %vm622_vm3, %v621_v63, %v802_v3 }
 0x130   : > { %v628_v5 = vpack.c.bf16 %v627_v4, %v627_v4 }
 0x132   : > { %864 = vmatmul.mubr.msk.bf16.vlgmr.msra.gmra.mrb[0].mxu0 %vm652_vm4, %v628_v5 }
 0x205   : > { %v690_v7 = vpop.f32.mrb[0].mxu0 }
 0x206   : > { %v691_v8 = vadd.f32 %v803_v6, %v690_v7  ;;  %v865_v9 = vpop.f32.mrb[1].mxu0 }
 0x207   : > { %v693_v10 = vpop.f32.mrb[2].mxu0 }
 0x208   : > { %v697_v11 = vmin.f32 %v691_v8, 0.0  ;;  %v866_v12 = vpop.f32.mrb[3].mxu0  ;;  %vm696_vm6 = vcmp.gt.f32.partialorder %v691_v8, 0.0 }
 0x20a   : > { %v698_v13 = vmul.f32 1.442695, %v697_v11 }
 0x20c   : > { %922 = vpow2.f32 %v698_v13 }
 0x216   : > { %v923_v14 = vpop.eup %922 }
 0x217   : > { %v807_v15 = vadd.f32 -1.0, %v923_v14 }
 0x219   : > { %v701_v16 = vsel %vm696_vm6, %v691_v8, %v807_v15 }
 0x21a   : > { %703 = vst.msk [vmem:[#allocation3] sm:$0x3] %vm702_vm5, %v701_v16 }
 0x21b PF: > { %p871_p7 = scmp.eq.s32.totalorder %s1003_s19, 3  ;;  %s966_s14 = smov [#allocation3]  }
 0x21c   : > { %s711_s15 = sshll.u32 %s966_s14, 4  ;;  %s712_s15 = int_to_ptr.vmem [resolvable:$true] %s711_s15 }
 0x21d   : > { %s924_s16 = scalar_lea.vmem %s712_s15, 32  ;;  %p931_p11 = scmp.lt.s32.totalorder %s712_s15, %s712_s15 }
 0x21e   : > { %p925_p8 = scmp.ne.s32.totalorder %s712_s15, %s924_s16  ;;  %p932_p12 = scmp.lt.s32.totalorder %s924_s16, %s924_s16 }
 0x220   : > { %p926_p9 = pnand %p925_p8, %p871_p7  ;;  %p933_p13 = por %p932_p12, %p931_p11 }
 0x222   : > { %p927_p10 = pneg %p926_p9 }
 0x224   : > { %p934_p0 = pnand %p933_p13, %p927_p10 }
 0x226   : > { %937 = shalt.err (!%p934_p0)
}
 0x227   : > { %s938_s21 = scalar_lea.hbm %s1102_s5, 32 }
 0x228   : > { %p939_p1 = scmp.ne.s32.totalorder %s1102_s5, %s938_s21  ;;  %p944_p4 = scmp.lt.u32.totalorder %s938_s21, %s1102_s5 }
 0x22a   : > { %p940_p2 = pnand %p939_p1, %p871_p7 }
 0x22c   : > { %p941_p3 = pneg %p940_p2 }
 0x22e   : > { %p946_p5 = pnand %p944_p4, %p941_p3 }
 0x230   : > { %949 = shalt.err (!%p946_p5)
}
 0x231   : > { %868 = dma.vmem_to_hbm [thread:$0]  (%p871_p7), %s712_s15, 32, %s1102_s5, [#allocation4]  }
 0x232   : > { %955 = dma.done.wait (%p871_p7), [#allocation4], 32  }
 0x233   : > { %957 = vsyncadd (%p871_p7), [#allocation4], 4294967264 }
 0x234 PF: > { %s16_s18 = sadd.s32 1, %s960_s18  }
 0x235   : > { %p13_p6 = scmp.ge.s32.totalorder %s16_s18, 6  }
 0x237   :  { %15 = sbr.rel (!%p13_p6) target bundleno = 1 (0x1), region = 78 }
 0x23e   :  { %724 = vsyncpa [#allocation4], 1 }
 0x23f   :  { %726 = vsyncpa [#allocation4 + $0x1], 1 }

// kernel: encoder_forward.2
= control target key start
LH: loop header
LB: loop body
LE: loop exit
PB: predicated region body
PF: predicated region fallthrough
CT: control target
= control target key end

     0   :  { %10 = vsyncpa [#allocation5], 0  ;;  %s3283_s18 = smov 0   ;;  %s3863_s0 = inlined_call_operand.vmem [shape: f32[2,18,72], index: 0, kind: input, shape index: {}]   ;;  %s3864_s1 = inlined_call_operand.hbm [shape: bf16[9,64,128], index: 1, kind: input, shape index: {}]   ;;  %s3865_s2 = inlined_call_operand.vmem [shape: f32[1,128], index: 2, kind: input, shape index: {}]   ;;  %s3866_s3 = inlined_call_operand.vmem [shape: bf16[9,128,128], index: 3, kind: input, shape index: {}]   ;;  %s3867_s4 = inlined_call_operand.vmem [shape: f32[1,128], index: 4, kind: input, shape index: {}]   ;;  %s3868_s5 = inlined_call_operand.vmem [shape: f32[2,16,128], index: 5, kind: output, shape index: {}]  }
   0x1 LB: > { %s3289_s19 = sadd.s32 4294967295, %s3241_s18   ;;  %p2381_p0 = scmp.ge.s32.totalorder %s3241_s18, 1  ;;  %s3241_s18 = sphi %s3283_s18, %s16_s18  }
   0x2   : > { %p157_p1 = scmp.lt.s32.totalorder %s3241_s18, 3  ;;  %s3243_s20 = smov [#allocation4]  }
   0x3   : > { %s169_s21 = sshll.u32 %s3243_s20, 4  ;;  %p3869_p3 = scmp.eq.s32.totalorder %s3289_s19, 0  ;;  %s170_s21 = int_to_ptr.vmem [resolvable:$true] %s169_s21 }
   0x4   : > { %p3293_p2 = pnand %p2381_p0, %p157_p1  ;;  %s3203_s26 = scalar_lea.hbm %s3864_s1, 4608 }
   0x5   : > { %p3204_p6 = scmp.ne.s32.totalorder %s3864_s1, %s3203_s26  ;;  %p3210_p10 = scmp.lt.u32.totalorder %s3203_s26, %s3864_s1 }
   0x6   : > { %s3871_s22 = scalar_select %p3293_p2, 1, 0 }
   0x7   : > { %p3062_p4 = pneg %p3293_p2 }
   0x9   : > { %p3302_p5 = pnand %p3869_p3, %p3062_p4 }
   0xb   : > { %p3205_p7 = pneg %p3302_p5 }
   0xd   : > { %p3206_p8 = pnand %p3205_p7, %p3204_p6 }
   0xf   : > { %p3207_p9 = pneg %p3206_p8 }
  0x11   : > { %p3212_p11 = pnand %p3210_p10, %p3207_p9 }
  0x13   : > { %3215 = shalt.err (!%p3212_p11)
}
  0x14   : > { %s3216_s6 = scalar_lea.vmem %s170_s21, 4608  ;;  %p3224_p1 = scmp.lt.s32.totalorder %s170_s21, %s170_s21 }
  0x15   : > { %p3217_p12 = scmp.ne.s32.totalorder %s170_s21, %s3216_s6  ;;  %p3225_p4 = scmp.lt.s32.totalorder %s3216_s6, %s3216_s6 }
  0x17   : > { %p3219_p13 = pnand %p3217_p12, %p3205_p7  ;;  %p3226_p3 = por %p3225_p4, %p3224_p1 }
  0x19   : > { %p3220_p0 = pneg %p3219_p13 }
  0x1b   : > { %p3227_p2 = pnand %p3226_p3, %p3220_p0 }
  0x1d   : > { %3230 = shalt.err (!%p3227_p2)
}
  0x1e   : > { %s3244_s7 = smov 64   ;;  %s3245_s8 = smov 4  }
  0x1f   : > { %3065 = dma.hbm_to_vmem [thread:$0]  (!%p3302_p5), %s3864_s1, 4608, %s170_s21, [#allocation5], %s3244_s7, %s3244_s7, %s3245_s8  }
  0x20   : > { %p3873_p6 = scmp.ne.s32.totalorder %s3871_s22, 0 }
  0x21   : > { %p3874_p8 = scmp.eq.s32.totalorder (!%p3873_p6), %s3289_s19, 0 }
  0x22   : > { %202 = sbr.rel (%p3873_p6) target bundleno = 1363 (0x553), region = 40 }
  0x29   : > { %3236 = dma.done.wait (%p3874_p8), [#allocation5], 4608   ;;  %p3875_p7 = pmov %p3874_p8 }
  0x2a   : > { %p230_p2 = scmp.lt.s32.totalorder %s3289_s19, 1  ;;  %v3246_v0 = vmov 0.0   ;;  %vm3247_vm0 = vmmov 0   ;;  %v3086_v9 = vld [vmem:[#allocation4 + $0x20] sm:$0xff]   ;;  %s3248_s15 = smov 124   ;;  %v3088_v11 = vld [vmem:[#allocation4 + $0x28] sm:$0xff]  }
  0x2b   : > { %3238 = vsyncadd (%p3875_p7), [#allocation5], 4294962688  ;;  %2769 = vmatprep.subr.bf16.mxu0 %v3246_v0  ;;  %1168 = vst [vmem:[#allocation3] sm:$0xff] %v3246_v0  ;;  %2781 = vmatprep.subr.bf16.mxu1 %v3246_v0  ;;  %v3087_v10 = vld [vmem:[#allocation4] sm:$0xff]   ;;  %v3089_v12 = vld [vmem:[#allocation4 + $0x8] sm:$0xff]   ;;  %s3249_s16 = smov 120  }
  0x2c   : > { %1170 = vst [vmem:[#allocation3 + $0x10] sm:$0xff] %v3246_v0  ;;  %1172 = vst [vmem:[#allocation3 + $0x20] sm:$0x3] %v3246_v0  ;;  %s3877_s19 = smov (!%p230_p2, %s3289_s19), 1  ;;  %2777 = vmatprep.mubr.msk.bf16.mxu0 %vm3247_vm0, %v3246_v0  ;;  %2789 = vmatprep.mubr.msk.bf16.mxu1 %vm3247_vm0, %v3246_v0  ;;  %v3090_v14 = vld [vmem:[#allocation4 + $0x30] sm:$0xff]   ;;  %v3092_v16 = vld [vmem:[#allocation4 + $0x38] sm:$0xff]  }
  0x2d   : > { %s3057_s11 = smul.u32 24, %s3877_s19  ;;  %2770 = vmatpush3.bf16.msra.mxu0 %v3086_v9  ;;  %2782 = vmatpush3.bf16.msra.mxu1 %v3087_v10  ;;  %v3091_v15 = vld [vmem:[#allocation4 + $0x10] sm:$0xff]   ;;  %v3093_v17 = vld [vmem:[#allocation4 + $0x18] sm:$0xff]   ;;  %vm288_vm1 = vcmask 523264   ;;  %v3095_v18 = vld [vmem:[#allocation4 + $0x60] sm:$0xff]   ;;  %vm994_vm2 = vcmask 130048  }
  0x2e   : > { %2771 = vmatprep.subr.bf16.mxu0 %v3246_v0  ;;  %2783 = vmatprep.subr.bf16.mxu1 %v3246_v0  ;;  %v3097_v19 = vld [vmem:[#allocation4 + $0x68] sm:$0xff]   ;;  %v3099_v20 = vld [vmem:[#allocation4 + $0x70] sm:$0xff]   ;;  %v3101_v21 = vld [vmem:[#allocation4 + $0x78] sm:$0xff]   ;;  %v3250_v60 = vmov -inf   ;;  %1169 = vst.msk [vmem:[#allocation3 + $0x8] sm:$0xff] %vm994_vm2, %v3246_v0  ;;  %vm999_vm3 = vcmask 123904  }
  0x2f   : > { %s234_s14 = scalar_lea.vmem %s3863_s0, %s3057_s11  ;;  %v3103_v22 = vld [vmem:[#allocation4 + $0xa0] sm:$0xff]   ;;  %v3105_v23 = vld [vmem:[#allocation4 + $0xa8] sm:$0xff]   ;;  %v3107_v24 = vld [vmem:[#allocation4 + $0xb0] sm:$0xff]   ;;  %993 = vst [vmem:[#allocation2] sm:$0xff] %v3250_v60  ;;  %vm1003_vm6 = vcmask 1040384   ;;  %s3251_s21 = smov 8  }
  0x30   : > { %v241_v1 = vld [vmem:[%s234_s14] sm:$0xff]  ;;  %v242_v2 = vld [vmem:[%s234_s14 + $0x8] sm:$0xff]  ;;  %v3109_v25 = vld [vmem:[#allocation4 + $0xb8] sm:$0xff]   ;;  %995 = vst.msk [vmem:[#allocation2 + $0x8] sm:$0xff] %vm994_vm2, %v3250_v60  ;;  %vm1016_vm7 = vcmask 1047617   ;;  %vm1018_vm8 = vcmask 64513  }
  0x31   : > { %v482_v3 = vld [vmem:[%s234_s14 + $0x1] sm:$0xff]  ;;  %v243_v4 = vpack.c.bf16 %v242_v2, %v241_v1  ;;  %v483_v5 = vld [vmem:[%s234_s14 + $0x9] sm:$0xff]  ;;  %2772 = vmatpush3.bf16.msra.mxu0 %v3088_v11  ;;  %2784 = vmatpush3.bf16.msra.mxu1 %v3089_v12  ;;  %v3100_v34 = vld [vmem:[#allocation4 + $0x58] sm:$0xff]   ;;  %996 = vst [vmem:[#allocation2 + $0x10] sm:$0xff] %v3250_v60  ;;  %vm1020_vm9 = vcmask 1047616   ;;  %vm1022_vm10 = vcmask 64512  }
  0x32   : > { %v484_v6 = vpack.c.bf16 %v483_v5, %v482_v3  ;;  %v727_v7 = vld [vmem:[%s234_s14 + $0x2] sm:$0xff]  ;;  %v728_v8 = vld [vmem:[%s234_s14 + $0xa] sm:$0xff]  ;;  %2773 = vmatprep.subr.bf16.mxu0 %v3246_v0  ;;  %2785 = vmatprep.subr.bf16.mxu1 %v3246_v0  ;;  %v3117_v38 = vld [vmem:[#allocation4 + $0xf8] sm:$0xff]   ;;  %997 = vst.msk [vmem:[#allocation2 + $0x18] sm:$0xff] %vm994_vm2, %v3250_v60  ;;  %vm1024_vm11 = vcmask 1040448   ;;  %vm1026_vm12 = vcmask 57344  }
  0x33   : > { %262 = vrot.lane.b32.xlu0 %v243_v4, %s3248_s15  ;;  %v3348_v13 = vpack.c.bf16 %v728_v8, %v727_v7  ;;  %v3094_v26 = vld [vmem:[#allocation4 + $0x40] sm:$0xff]   ;;  %v3096_v29 = vld [vmem:[#allocation4 + $0x48] sm:$0xff]   ;;  %v3098_v32 = vld [vmem:[#allocation4 + $0x50] sm:$0xff]   ;;  %998 = vst [vmem:[#allocation2 + $0x20] sm:$0x3] %v3250_v60  ;;  %s3252_s22 = smov 112  }
  0x34   : > { %574 = vrot.lane.b32.xlu1 %v484_v6, %s3248_s15  ;;  %v3111_v30 = vld [vmem:[#allocation4 + $0xe0] sm:$0xff]   ;;  %v3113_v33 = vld [vmem:[#allocation4 + $0xe8] sm:$0xff]   ;;  %v3115_v35 = vld [vmem:[#allocation4 + $0xf0] sm:$0xff]   ;;  %1171 = vst.msk [vmem:[#allocation3 + $0x18] sm:$0xff] %vm994_vm2, %v3246_v0  ;;  %vm1070_vm13 = vcmask 1046528   ;;  %vm1121_vm14 = vcmask 1045504  }
  0x35   : > { %2774 = vmatpush3.bf16.msra.mxu0 %v3090_v14  ;;  %2786 = vmatpush3.bf16.msra.mxu1 %v3091_v15  ;;  %v3102_v37 = vld [vmem:[#allocation4 + $0x80] sm:$0xff]   ;;  %v3104_v39 = vld [vmem:[#allocation4 + $0x88] sm:$0xff]   ;;  %v3106_v41 = vld [vmem:[#allocation4 + $0x90] sm:$0xff]   ;;  %1000 = vst.msk [vmem:[#allocation2 + $0x28] sm:$0x3] %vm999_vm3, %v3250_v60  ;;  %vm1044_vm15 = vcmask 982016  }
  0x36   : > { %2775 = vmatprep.subr.bf16.mxu0 %v3246_v0  ;;  %2787 = vmatprep.subr.bf16.mxu1 %v3246_v0  ;;  %v3108_v42 = vld [vmem:[#allocation4 + $0x98] sm:$0xff]   ;;  %v3110_v43 = vld [vmem:[#allocation4 + $0xc0] sm:$0xff]   ;;  %v3112_v44 = vld [vmem:[#allocation4 + $0xc8] sm:$0xff]   ;;  %1173 = vst.msk [vmem:[#allocation3 + $0x28] sm:$0x3] %vm999_vm3, %v3246_v0  ;;  %s2642_s8 = sshll.u32 %s3877_s19, 4 }
  0x37   : > { %410 = vrot.lane.b32.xlu0 %v243_v4, %s3249_s16  ;;  %v3114_v45 = vld [vmem:[#allocation4 + $0xd0] sm:$0xff]   ;;  %v3116_v46 = vld [vmem:[#allocation4 + $0xd8] sm:$0xff]   ;;  %v3118_v47 = vld [vmem:[#allocation4 + $0x100] sm:$0xff]   ;;  %vm1557_vm2 = vsmask.f32 7424  ;;  %s239_s11 = scalar_lea.vmem %s3868_s5, %s2642_s8 }
  0x38   : > { %655 = vrot.lane.b32.xlu1 %v484_v6, %s3249_s16  ;;  %v3119_v48 = vld [vmem:[#allocation4 + $0x108] sm:$0xff]   ;;  %v3120_v49 = vld [vmem:[#allocation4 + $0x110] sm:$0xff]   ;;  %v3121_v50 = vld [vmem:[#allocation4 + $0x118] sm:$0xff]  }
  0x39   : > { %2776 = vmatpush3.bf16.msra.mxu0 %v3092_v16  ;;  %2788 = vmatpush3.bf16.msra.mxu1 %v3093_v17 }
  0x3a   : > { %2793 = vmatprep.subr.bf16.mxu0 %v3246_v0  ;;  %2805 = vmatprep.subr.bf16.mxu1 %v3246_v0 }
  0x3b   : > { %819 = vrot.lane.b32.xlu0 %v3348_v13, %s3248_s15 }
  0x3c   : > { %900 = vrot.lane.b32.xlu1 %v3348_v13, %s3249_s16  ;;  %2790 = vmatmul.mubr.msk.bf16.vlgmr.msra.gmra.mrb[0].mxu1 %vm288_vm1, %v243_v4 }
  0x3d   : > { %2806 = vmatpush3.bf16.msra.mxu1 %v3095_v18  ;;  %2813 = vmatprep.mubr.msk.bf16.mxu1 %vm3247_vm0, %v3246_v0 }
  0x3e   : > { %2807 = vmatprep.subr.bf16.mxu1 %v3246_v0 }
  0x41   : > { %2808 = vmatpush3.bf16.msra.mxu1 %v3097_v19 }
  0x42   : > { %2809 = vmatprep.subr.bf16.mxu1 %v3246_v0 }
  0x45   : > { %2810 = vmatpush3.bf16.msra.mxu1 %v3099_v20 }
  0x46   : > { %2811 = vmatprep.subr.bf16.mxu1 %v3246_v0 }
  0x49   : > { %2812 = vmatpush3.bf16.msra.mxu1 %v3101_v21 }
  0x4a   : > { %2829 = vmatprep.subr.bf16.mxu1 %v3246_v0 }
  0x4c   : > { %2814 = vmatmul.mubr.msk.bf16.vlgmr.msra.gmra.mrb[4].mxu1 %vm288_vm1, %v484_v6 }
  0x4d   : > { %2830 = vmatpush3.bf16.msra.mxu1 %v3103_v22  ;;  %2837 = vmatprep.mubr.msk.bf16.mxu1 %vm3247_vm0, %v3246_v0 }
  0x4e   : > { %2831 = vmatprep.subr.bf16.mxu1 %v3246_v0 }
  0x51   : > { %2832 = vmatpush3.bf16.msra.mxu1 %v3105_v23 }
  0x52   : > { %2833 = vmatprep.subr.bf16.mxu1 %v3246_v0 }
  0x55   : > { %2834 = vmatpush3.bf16.msra.mxu1 %v3107_v24 }
  0x56   : > { %2835 = vmatprep.subr.bf16.mxu1 %v3246_v0 }
  0x59   : > { %2836 = vmatpush3.bf16.msra.mxu1 %v3109_v25 }
  0x5a   : > { %2853 = vmatprep.subr.bf16.mxu1 %v3246_v0 }
  0xa5   : > { %v263_v27 = vpop.permute.xlu0 %262 }
  0xa6   : > { %2778 = vmatmul.mubr.msk.bf16.vlgmr.msra.gmra.mrb[0].mxu0 %vm288_vm1, %v263_v27  ;;  %v575_v28 = vpop.permute.xlu1 %574 }
  0xa7   : > { %2794 = vmatpush3.bf16.msra.mxu0 %v3094_v26  ;;  %2801 = vmatprep.mubr.msk.bf16.mxu0 %vm3247_vm0, %v3246_v0 }
  0xa8   : > { %2795 = vmatprep.subr.bf16.mxu0 %v3246_v0 }
  0xa9   : > { %v411_v36 = vpop.permute.xlu0 %410 }
  0xaa   : > { %v656_v31 = vpop.permute.xlu1 %655 }
  0xab   : > { %2796 = vmatpush3.bf16.msra.mxu0 %v3096_v29  ;;  %2838 = vmatmul.mubr.msk.bf16.vlgmr.msra.gmra.mrb[8].mxu1 %vm288_vm1, %v656_v31 }
  0xac   : > { %2797 = vmatprep.subr.bf16.mxu0 %v3246_v0  ;;  %2854 = vmatpush3.bf16.msra.mxu1 %v3111_v30 }
  0xad   : > { %2855 = vmatprep.subr.bf16.mxu1 %v3246_v0  ;;  %2861 = vmatprep.mubr.msk.bf16.mxu1 %vm3247_vm0, %v3246_v0  ;;  %v820_v40 = vpop.permute.xlu0 %819 }
  0xae   : > { %v901_v51 = vpop.permute.xlu1 %900 }
  0xaf   : > { %2798 = vmatpush3.bf16.msra.mxu0 %v3098_v32 }
  0xb0   : > { %2799 = vmatprep.subr.bf16.mxu0 %v3246_v0  ;;  %2856 = vmatpush3.bf16.msra.mxu1 %v3113_v33 }
  0xb1   : > { %2857 = vmatprep.subr.bf16.mxu1 %v3246_v0 }
  0xb3   : > { %2800 = vmatpush3.bf16.msra.mxu0 %v3100_v34 }
  0xb4   : > { %2817 = vmatprep.subr.bf16.mxu0 %v3246_v0  ;;  %2858 = vmatpush3.bf16.msra.mxu1 %v3115_v35 }
  0xb5   : > { %2859 = vmatprep.subr.bf16.mxu1 %v3246_v0 }
  0xb6   : > { %2802 = vmatmul.mubr.msk.bf16.vlgmr.msra.gmra.mrb[4].mxu0 %vm288_vm1, %v411_v36 }
  0xb7   : > { %2818 = vmatpush3.bf16.msra.mxu0 %v3102_v37  ;;  %2825 = vmatprep.mubr.msk.bf16.mxu0 %vm3247_vm0, %v3246_v0  ;;  %v2434_v37 = vld [vmem:[%s3865_s2] ss:$0 sm:$0xff] }
  0xb8   : > { %2819 = vmatprep.subr.bf16.mxu0 %v3246_v0  ;;  %2860 = vmatpush3.bf16.msra.mxu1 %v3117_v38 }
  0xb9   : > { %2877 = vmatprep.subr.bf16.mxu1 %v3246_v0 }
  0xbb   : > { %2820 = vmatpush3.bf16.msra.mxu0 %v3104_v39  ;;  %2862 = vmatmul.mubr.msk.bf16.vlgmr.msra.gmra.mrb[12].mxu1 %vm288_vm1, %v820_v40 }
  0xbc   : > { %2821 = vmatprep.subr.bf16.mxu0 %v3246_v0  ;;  %2893 = vmatprep.mubr.msk.bf16.mxu1 %vm3247_vm0, %v3246_v0 }
  0xbf   : > { %2822 = vmatpush3.bf16.msra.mxu0 %v3106_v41 }
  0xc0   : > { %2823 = vmatprep.subr.bf16.mxu0 %v3246_v0 }
  0xc3   : > { %2824 = vmatpush3.bf16.msra.mxu0 %v3108_v42 }
  0xc4   : > { %2841 = vmatprep.subr.bf16.mxu0 %v3246_v0 }
  0xc6   : > { %2826 = vmatmul.mubr.msk.bf16.vlgmr.msra.gmra.mrb[8].mxu0 %vm288_vm1, %v575_v28 }
  0xc7   : > { %2842 = vmatpush3.bf16.msra.mxu0 %v3110_v43  ;;  %2849 = vmatprep.mubr.msk.bf16.mxu0 %vm3247_vm0, %v3246_v0 }
  0xc8   : > { %2843 = vmatprep.subr.bf16.mxu0 %v3246_v0 }
  0xcb   : > { %2844 = vmatpush3.bf16.msra.mxu0 %v3112_v44 }
  0xcc   : > { %2845 = vmatprep.subr.bf16.mxu0 %v3246_v0 }
  0xcf   : > { %2846 = vmatpush3.bf16.msra.mxu0 %v3114_v45 }
  0xd0   : > { %2847 = vmatprep.subr.bf16.mxu0 %v3246_v0 }
  0xd3   : > { %2848 = vmatpush3.bf16.msra.mxu0 %v3116_v46 }
  0xd4   : > { %2865 = vmatprep.subr.bf16.mxu0 %v3246_v0 }
  0xd6   : > { %2850 = vmatmul.mubr.msk.bf16.vlgmr.msra.gmra.mrb[12].mxu0 %vm288_vm1, %v3348_v13 }
  0xd7   : > { %2866 = vmatpush3.bf16.msra.mxu0 %v3118_v47  ;;  %2873 = vmatprep.mubr.msk.bf16.mxu0 %vm3247_vm0, %v3246_v0 }
  0xd8   : > { %2867 = vmatprep.subr.bf16.mxu0 %v3246_v0 }
  0xdb   : > { %2868 = vmatpush3.bf16.msra.mxu0 %v3119_v48 }
  0xdc   : > { %2869 = vmatprep.subr.bf16.mxu0 %v3246_v0 }
  0xdf   : > { %2870 = vmatpush3.bf16.msra.mxu0 %v3120_v49 }
  0xe0   : > { %2871 = vmatprep.subr.bf16.mxu0 %v3246_v0 }
  0xe3   : > { %2872 = vmatpush3.bf16.msra.mxu0 %v3121_v50 }
  0xe4   : > { %2897 = vmatprep.subr.bf16.mxu0 %v3246_v0 }
  0xe6   : > { %2874 = vmatmul.mubr.msk.bf16.vlgmr.msra.gmra.mrb[16].mxu0 %vm288_vm1, %v901_v51  ;;  %vm1059_vm1 = vcmask 916480  }
  0xe7   : > { %2913 = vmatprep.mubr.msk.bf16.mxu0 %vm3247_vm0, %v3246_v0 }
 0x10f   : > { %v394_v52 = vpop.f32.mrb[0].mxu1 }
 0x110   : > { %v2791_v53 = vpop.f32.mrb[1].mxu1 }
 0x111   : > { %v397_v54 = vpop.f32.mrb[2].mxu1 }
 0x112   : > { %v2792_v55 = vpop.f32.mrb[3].mxu1 }
 0x11f   : > { %v555_v56 = vpop.f32.mrb[4].mxu1 }
 0x120   : > { %v2815_v57 = vpop.f32.mrb[5].mxu1 }
 0x121   : > { %v558_v58 = vpop.f32.mrb[6].mxu1 }
 0x122   : > { %v2816_v59 = vpop.f32.mrb[7].mxu1 }
 0x179   : > { %v326_v61 = vpop.f32.mrb[0].mxu0 }
 0x17a   : > { %v395_v62 = vadd.f32 %v394_v52, %v326_v61  ;;  %v2779_v63 = vpop.f32.mrb[1].mxu0 }
 0x17b   : > { %v329_v1 = vpop.f32.mrb[2].mxu0 }
 0x17c   : > { %v398_v2 = vadd.f32 %v397_v54, %v329_v1  ;;  %v2780_v3 = vpop.f32.mrb[3].mxu0 }
 0x17e   : > { %v718_v4 = vpop.f32.mrb[8].mxu1 }
 0x17f   : > { %v2839_v5 = vpop.f32.mrb[9].mxu1 }
 0x180   : > { %v721_v6 = vpop.f32.mrb[10].mxu1 }
 0x181   : > { %v2840_v7 = vpop.f32.mrb[11].mxu1 }
 0x189   : > { %v473_v8 = vpop.f32.mrb[4].mxu0 }
 0x18a   : > { %v480_v9 = vadd.f32 %v473_v8, %v395_v62  ;;  %v2803_v10 = vpop.f32.mrb[5].mxu0 }
 0x18b   : > { %v476_v11 = vpop.f32.mrb[6].mxu0 }
 0x18c   : > { %v481_v12 = vadd.f32 %v476_v11, %v398_v2  ;;  %v562_v13 = vadd.f32 %v555_v56, %v480_v9  ;;  %v2804_v14 = vpop.f32.mrb[7].mxu0 }
 0x18e   : > { %v563_v15 = vadd.f32 %v558_v58, %v481_v12  ;;  %v882_v16 = vpop.f32.mrb[12].mxu1 }
 0x18f   : > { %v2863_v17 = vpop.f32.mrb[13].mxu1 }
 0x190   : > { %v885_v18 = vpop.f32.mrb[14].mxu1 }
 0x191   : > { %v2864_v19 = vpop.f32.mrb[15].mxu1 }
 0x199   : > { %v637_v20 = vpop.f32.mrb[8].mxu0 }
 0x19a   : > { %v644_v21 = vadd.f32 %v637_v20, %v562_v13  ;;  %v2827_v22 = vpop.f32.mrb[9].mxu0 }
 0x19b   : > { %v640_v23 = vpop.f32.mrb[10].mxu0 }
 0x19c   : > { %v645_v24 = vadd.f32 %v640_v23, %v563_v15  ;;  %v725_v25 = vadd.f32 %v718_v4, %v644_v21  ;;  %v2828_v26 = vpop.f32.mrb[11].mxu0 }
 0x19e   : > { %v726_v27 = vadd.f32 %v721_v6, %v645_v24 }
 0x1a9   : > { %v800_v28 = vpop.f32.mrb[12].mxu0 }
 0x1aa   : > { %v807_v29 = vadd.f32 %v800_v28, %v725_v25  ;;  %v2851_v30 = vpop.f32.mrb[13].mxu0 }
 0x1ab   : > { %v803_v31 = vpop.f32.mrb[14].mxu0  ;;  %v3123_v30 = vld [vmem:[%s3866_s3 + $0x8] sm:$0xff]  }
 0x1ac   : > { %v808_v32 = vadd.f32 %v803_v31, %v726_v27  ;;  %v889_v33 = vadd.f32 %v882_v16, %v807_v29  ;;  %v2852_v34 = vpop.f32.mrb[15].mxu0  ;;  %v3122_v29 = vld [vmem:[%s3866_s3] sm:$0xff]   ;;  %v3489_v31 = vld [vmem:[#allocation3] sm:$0xff] }
 0x1ad   : > { %2898 = vmatpush3.bf16.msra.mxu0 %v3122_v29  ;;  %v3126_v34 = vld [vmem:[%s3866_s3 + $0x20] sm:$0xff]  }
 0x1ae   : > { %v890_v35 = vadd.f32 %v885_v18, %v808_v32  ;;  %2899 = vmatprep.subr.bf16.mxu0 %v3489_v31  ;;  %v3124_v32 = vld [vmem:[%s3866_s3 + $0x10] sm:$0xff]  }
 0x1b1   : > { %2900 = vmatpush3.bf16.msra.mxu0 %v3123_v30  ;;  %v3139_v30 = vld [vmem:[%s3866_s3 + $0x48] sm:$0xff]  }
 0x1b2   : > { %2901 = vmatprep.subr.bf16.mxu0 %v3489_v31 }
 0x1b5   : > { %2902 = vmatpush3.bf16.msra.mxu0 %v3124_v32  ;;  %v3140_v32 = vld [vmem:[%s3866_s3 + $0x50] sm:$0xff]  }
 0x1b6   : > { %2903 = vmatprep.subr.bf16.mxu0 %v3489_v31 }
 0x1b9   : > { %v963_v36 = vpop.f32.mrb[16].mxu0 }
 0x1ba   : > { %v970_v38 = vadd.f32 %v963_v36, %v889_v33  ;;  %v2875_v39 = vpop.f32.mrb[17].mxu0  ;;  %v3125_v33 = vld [vmem:[%s3866_s3 + $0x18] sm:$0xff]  }
 0x1bb   : > { %v966_v40 = vpop.f32.mrb[18].mxu0  ;;  %2904 = vmatpush3.bf16.msra.mxu0 %v3125_v33  ;;  %v3141_v33 = vld [vmem:[%s3866_s3 + $0x58] sm:$0xff]  }
 0x1bc   : > { %v979_v41 = vadd.f32 %v2434_v37, %v970_v38  ;;  %v971_v42 = vadd.f32 %v966_v40, %v890_v35  ;;  %v2876_v43 = vpop.f32.mrb[19].mxu0  ;;  %2905 = vmatprep.subr.bf16.mxu0 %v3489_v31 }
 0x1be   : > { %v983_v44 = vmin.f32 %v979_v41, 0.0  ;;  %v980_v45 = vadd.f32 %v2434_v37, %v971_v42  ;;  %vm981_vm4 = vcmp.gt.f32.partialorder %v979_v41, 0.0 }
 0x1bf   : > { %2906 = vmatpush3.bf16.msra.mxu0 %v3126_v34  ;;  %v3143_v34 = vld [vmem:[%s3866_s3 + $0x60] sm:$0xff]  }
 0x1c0   : > { %v985_v46 = vmul.f32 1.442695, %v983_v44  ;;  %v984_v47 = vmin.f32 %v980_v45, 0.0  ;;  %vm982_vm5 = vcmp.gt.f32.partialorder %v980_v45, 0.0  ;;  %2907 = vmatprep.subr.bf16.mxu0 %v3489_v31 }
 0x1c2   : > { %3194 = vpow2.f32 %v985_v46  ;;  %v987_v48 = vmul.f32 1.442695, %v984_v47 }
 0x1c4   : > { %3196 = vpow2.f32 %v987_v48 }
 0x1cc   : > { %v3195_v49 = vpop.eup %3194 }
 0x1cd   : > { %v2435_v50 = vadd.f32 -1.0, %v3195_v49 }
 0x1ce   : > { %v3197_v51 = vpop.eup %3196 }
 0x1cf   : > { %v2436_v52 = vadd.f32 -1.0, %v3197_v51  ;;  %v991_v53 = vsel %vm981_vm4, %v979_v41, %v2435_v50 }
 0x1d0   : > { %v1004_v54 = vrot.slane %v991_v53, 7 }
 0x1d1   : > { %v992_v55 = vsel %vm982_vm5, %v980_v45, %v2436_v52 }
 0x1d2   : > { %1007 = vrot.lane.b32.xlu0 %v1004_v54, %s3251_s21  ;;  %v1005_v56 = vrot.slane %v992_v55, 7 }
 0x1d4   : > { %v1006_v57 = vsel %vm1003_vm6, %v1004_v54, %v1005_v56 }
 0x1d5   : > { %1009 = vrot.lane.b32.xlu1 %v1006_v57, %s3251_s21 }
 0x1d6   : > { %1011 = vrot.lane.b32.xlu0 %v1005_v56, %s3251_s21 }
 0x244   : > { %v1008_v0 = vpop.permute.xlu0 %1007 }
 0x245   : > { %1017 = vst.msk [vmem:[#allocation2] sm:$0xfe] %vm1016_vm7, %v1008_v0 }
 0x246   : > { %1019 = vst.msk [vmem:[#allocation2 + $0x8] sm:$0xfe] %vm1018_vm8, %v1008_v0 }
 0x247   : > { %v1010_v58 = vpop.permute.xlu1 %1009 }
 0x248   : > { %1021 = vst.msk [vmem:[#allocation2 + $0x10] sm:$0xff] %vm1020_vm9, %v1010_v58  ;;  %v1012_v59 = vpop.permute.xlu0 %1011 }
 0x249   : > { %1023 = vst.msk [vmem:[#allocation2 + $0x18] sm:$0xff] %vm1022_vm10, %v1010_v58 }
 0x24a   : > { %1025 = vst.msk [vmem:[#allocation2 + $0x20] sm:$0x1] %vm1024_vm11, %v1012_v59 }
 0x24b   : > { %1027 = vst.msk [vmem:[#allocation2 + $0x28] sm:$0x1] %vm1026_vm12, %v1012_v59 }
 0x24c   : > { %v3432_v61 = vld [vmem:[#allocation2] sm:$0xff] }
 0x24d   : > { %v1030_v60 = vld [vmem:[#allocation2 + $0x8] sm:$0xff]  ;;  %1036 = vrot.lane.b32.xlu1 %v3432_v61, %s3249_s16  ;;  %v1066_v2 = vld [vmem:[#allocation2] sm:$0xfe] }
 0x24e   : > { %1038 = vrot.lane.b32.xlu0 %v1030_v60, %s3249_s16  ;;  %v1080_v1 = vld [vmem:[#allocation2 + $0x8] sm:$0xfe]  ;;  %v1071_v8 = vrot.slane %v1066_v2, 1  ;;  %v1117_v16 = vld [vmem:[#allocation2] sm:$0xfc] }
 0x24f   : > { %v3440_v63 = vld [vmem:[#allocation2 + $0x10] sm:$0xff]  ;;  %v1084_v7 = vrot.slane %v1080_v1, 1  ;;  %v1131_v15 = vld [vmem:[#allocation2 + $0x8] sm:$0xfc]  ;;  %v1122_v22 = vrot.slane %v1117_v16, 2  ;;  %v3129_v16 = vld [vmem:[%s3866_s3 + $0x38] sm:$0xff]  }
 0x250   : > { %v1031_v62 = vld [vmem:[#allocation2 + $0x18] sm:$0xff]  ;;  %v1072_v4 = vrot.slane %v3440_v63, 1  ;;  %v1123_v18 = vrot.slane %v3440_v63, 2  ;;  %v1135_v21 = vrot.slane %v1131_v15, 2 }
 0x251   : > { %1051 = vrot.lane.b32.xlu1 %v3432_v61, %s3252_s22  ;;  %v1085_v3 = vrot.slane %v1031_v62, 1  ;;  %v1067_v6 = vld [vmem:[#allocation2 + $0x20] sm:$0x1]  ;;  %v1136_v17 = vrot.slane %v1031_v62, 2 }
 0x252   : > { %1053 = vrot.lane.b32.xlu0 %v1030_v60, %s3252_s22  ;;  %v1081_v5 = vld [vmem:[#allocation2 + $0x28] sm:$0x1]  ;;  %v3451_v10 = vsel %vm1070_vm13, %v1071_v8, %v1072_v4  ;;  %v1074_v12 = vrot.slane %v1067_v6, 1  ;;  %v1118_v20 = vld [vmem:[#allocation2 + $0x20] sm:$0x3]  ;;  %v3470_v24 = vsel %vm1121_vm14, %v1122_v22, %v1123_v18 }
 0x253   : > { %v1086_v9 = vsel %vm1070_vm13, %v1084_v7, %v1085_v3  ;;  %v1087_v11 = vrot.slane %v1081_v5, 1  ;;  %v1132_v19 = vld [vmem:[#allocation2 + $0x28] sm:$0x3]  ;;  %v1137_v23 = vsel %vm1121_vm14, %v1135_v21, %v1136_v17  ;;  %v1125_v26 = vrot.slane %v1118_v20, 2 }
 0x254   : > { %v3458_v14 = vsel %vm1070_vm13, %v1072_v4, %v1074_v12  ;;  %v1138_v25 = vrot.slane %v1132_v19, 2  ;;  %v3128_v12 = vld [vmem:[%s3866_s3 + $0x30] sm:$0xff]  }
 0x255   : > { %1040 = vrot.lane.b32.xlu1 %v3440_v63, %s3249_s16  ;;  %v1088_v13 = vsel %vm1070_vm13, %v1085_v3, %v1087_v11  ;;  %v3475_v28 = vsel %vm1121_vm14, %v1123_v18, %v1125_v26  ;;  %v3127_v3 = vld [vmem:[%s3866_s3 + $0x28] sm:$0xff]  }
 0x256   : > { %1042 = vrot.lane.b32.xlu0 %v1031_v62, %s3249_s16  ;;  %v1139_v27 = vsel %vm1121_vm14, %v1136_v17, %v1138_v25  ;;  %2908 = vmatpush3.bf16.msra.mxu0 %v3127_v3 }
 0x257   : > { %2909 = vmatprep.subr.bf16.mxu0 %v3489_v31 }
 0x259   : > { %1055 = vrot.lane.b32.xlu1 %v3440_v63, %s3252_s22 }
 0x25a   : > { %1057 = vrot.lane.b32.xlu0 %v1031_v62, %s3252_s22  ;;  %2910 = vmatpush3.bf16.msra.mxu0 %v3128_v12 }
 0x25b   : > { %2911 = vmatprep.subr.bf16.mxu0 %v3489_v31 }
 0x25d   : > { %1089 = vrot.lane.b32.xlu1 %v3451_v10, %s3249_s16 }
 0x25e   : > { %1091 = vrot.lane.b32.xlu0 %v1086_v9, %s3249_s16  ;;  %2912 = vmatpush3.bf16.msra.mxu0 %v3129_v16  ;;  %v3133_v16 = vld [vmem:[%s3866_s3 + $0xd8] sm:$0xff]  }
 0x25f   : > { %2937 = vmatprep.subr.bf16.mxu0 %v3489_v31 }
 0x261   : > { %1093 = vrot.lane.b32.xlu1 %v3458_v14, %s3249_s16 }
 0x262   : > { %1095 = vrot.lane.b32.xlu0 %v1088_v13, %s3249_s16 }
 0x265   : > { %1103 = vrot.lane.b32.xlu1 %v3451_v10, %s3252_s22 }
 0x266   : > { %1105 = vrot.lane.b32.xlu0 %v1086_v9, %s3252_s22 }
 0x269   : > { %1107 = vrot.lane.b32.xlu1 %v3458_v14, %s3252_s22 }
 0x26a   : > { %1109 = vrot.lane.b32.xlu0 %v1088_v13, %s3252_s22 }
 0x26d   : > { %1140 = vrot.lane.b32.xlu1 %v3470_v24, %s3249_s16 }
 0x26e   : > { %1142 = vrot.lane.b32.xlu0 %v1137_v23, %s3249_s16 }
 0x271   : > { %1144 = vrot.lane.b32.xlu1 %v3475_v28, %s3249_s16 }
 0x272   : > { %1146 = vrot.lane.b32.xlu0 %v1139_v27, %s3249_s16 }
 0x275   : > { %1154 = vrot.lane.b32.xlu1 %v3470_v24, %s3252_s22 }
 0x276   : > { %1156 = vrot.lane.b32.xlu0 %v1137_v23, %s3252_s22 }
 0x279   : > { %1158 = vrot.lane.b32.xlu1 %v3475_v28, %s3252_s22 }
 0x27a   : > { %1160 = vrot.lane.b32.xlu0 %v1139_v27, %s3252_s22 }
 0x2bf   : > { %v1037_v36 = vpop.permute.xlu1 %1036 }
 0x2c0   : > { %v1039_v35 = vpop.permute.xlu0 %1038 }
 0x2c1   : > { %v1045_v47 = vsel %vm1044_vm15, %v1037_v36, %v1039_v35  ;;  %v3145_v35 = vld [vmem:[%s3866_s3 + $0x68] sm:$0xff]   ;;  %v3147_v36 = vld [vmem:[%s3866_s3 + $0x70] sm:$0xff]  }
 0x2c2   : > { %v1049_v49 = vmax.f32 %v3432_v61, %v1045_v47 }
 0x2c3   : > { %v1052_v38 = vpop.permute.xlu1 %1051 }
 0x2c4   : > { %v1054_v37 = vpop.permute.xlu0 %1053 }
 0x2c5   : > { %v1060_v48 = vsel %vm1059_vm1, %v1052_v38, %v1054_v37  ;;  %v3149_v37 = vld [vmem:[%s3866_s3 + $0x78] sm:$0xff]  }
 0x2c6   : > { %v1064_v53 = vmax.f32 %v1049_v49, %v1060_v48 }
 0x2c7   : > { %v1041_v40 = vpop.permute.xlu1 %1040 }
 0x2c8   : > { %v1043_v39 = vpop.permute.xlu0 %1042  ;;  %v1078_v59 = vmax.f32 %v1064_v53, %v3451_v10  ;;  %v3130_v53 = vld [vmem:[%s3866_s3 + $0xc0] sm:$0xff]  }
 0x2c9   : > { %v1046_v52 = vsel %vm1044_vm15, %v1041_v40, %v1043_v39 }
 0x2ca   : > { %v1050_v55 = vmax.f32 %v3440_v63, %v1046_v52 }
 0x2cb   : > { %v1056_v42 = vpop.permute.xlu1 %1055 }
 0x2cc   : > { %v1058_v41 = vpop.permute.xlu0 %1057 }
 0x2cd   : > { %v1061_v54 = vsel %vm1059_vm1, %v1056_v42, %v1058_v41 }
 0x2ce   : > { %v1065_v58 = vmax.f32 %v1050_v55, %v1061_v54 }
 0x2cf   : > { %v1090_v44 = vpop.permute.xlu1 %1089 }
 0x2d0   : > { %v1092_v43 = vpop.permute.xlu0 %1091  ;;  %v1079_v63 = vmax.f32 %v1065_v58, %v3458_v14 }
 0x2d1   : > { %v1097_v0 = vsel %vm1044_vm15, %v1090_v44, %v1092_v43 }
 0x2d2   : > { %v1101_v62 = vmax.f32 %v1078_v59, %v1097_v0  ;;  %v3131_v59 = vld [vmem:[%s3866_s3 + $0xc8] sm:$0xff]  }
 0x2d3   : > { %v1094_v46 = vpop.permute.xlu1 %1093 }
 0x2d4   : > { %v1096_v45 = vpop.permute.xlu0 %1095 }
 0x2d5   : > { %v1098_v2 = vsel %vm1044_vm15, %v1094_v46, %v1096_v45 }
 0x2d6   : > { %v1102_v6 = vmax.f32 %v1079_v63, %v1098_v2 }
 0x2d7   : > { %v1104_v51 = vpop.permute.xlu1 %1103 }
 0x2d8   : > { %v1106_v50 = vpop.permute.xlu0 %1105 }
 0x2d9   : > { %v1111_v60 = vsel %vm1059_vm1, %v1104_v51, %v1106_v50 }
 0x2da   : > { %v1115_v4 = vmax.f32 %v1101_v62, %v1111_v60 }
 0x2db   : > { %v1108_v57 = vpop.permute.xlu1 %1107 }
 0x2dc   : > { %v1110_v56 = vpop.permute.xlu0 %1109  ;;  %v1129_v11 = vmax.f32 %v1115_v4, %v3470_v24 }
 0x2dd   : > { %v1112_v5 = vsel %vm1059_vm1, %v1108_v57, %v1110_v56 }
 0x2de   : > { %v1116_v10 = vmax.f32 %v1102_v6, %v1112_v5 }
 0x2df   : > { %v1141_v1 = vpop.permute.xlu1 %1140 }
 0x2e0   : > { %v1143_v61 = vpop.permute.xlu0 %1142  ;;  %v1130_v19 = vmax.f32 %v1116_v10, %v3475_v28  ;;  %v3138_v28 = vld [vmem:[%s3866_s3 + $0x40] sm:$0xff]  }
 0x2e1   : > { %v1148_v9 = vsel %vm1044_vm15, %v1141_v1, %v1143_v61  ;;  %2878 = vmatpush3.bf16.msra.mxu1 %v3138_v28  ;;  %v3136_v28 = vld [vmem:[%s3866_s3 + $0xf0] sm:$0xff]  }
 0x2e2   : > { %v1152_v13 = vmax.f32 %v1129_v11, %v1148_v9  ;;  %2879 = vmatprep.subr.bf16.mxu1 %v3489_v31 }
 0x2e3   : > { %v1145_v8 = vpop.permute.xlu1 %1144 }
 0x2e4   : > { %v1147_v7 = vpop.permute.xlu0 %1146 }
 0x2e5   : > { %v1149_v17 = vsel %vm1044_vm15, %v1145_v8, %v1147_v7  ;;  %2880 = vmatpush3.bf16.msra.mxu1 %v3139_v30  ;;  %v3132_v7 = vld [vmem:[%s3866_s3 + $0xd0] sm:$0xff]  }
 0x2e6   : > { %v1153_v21 = vmax.f32 %v1130_v19, %v1149_v17  ;;  %2881 = vmatprep.subr.bf16.mxu1 %v3489_v31 }
 0x2e7   : > { %v1155_v15 = vpop.permute.xlu1 %1154 }
 0x2e8   : > { %v1157_v14 = vpop.permute.xlu0 %1156 }
 0x2e9   : > { %v1162_v18 = vsel %vm1059_vm1, %v1155_v15, %v1157_v14  ;;  %2882 = vmatpush3.bf16.msra.mxu1 %v3140_v32 }
 0x2ea   : > { %v1166_v20 = vmax.f32 %v1152_v13, %v1162_v18  ;;  %2883 = vmatprep.subr.bf16.mxu1 %v3489_v31 }
 0x2eb   : > { %v1159_v24 = vpop.permute.xlu1 %1158 }
 0x2ec   : > { %v1176_v22 = vrot.slane %v1166_v20, 7  ;;  %v1161_v23 = vpop.permute.xlu0 %1160 }
 0x2ed   : > { %v1163_v25 = vsel %vm1059_vm1, %v1159_v24, %v1161_v23  ;;  %2884 = vmatpush3.bf16.msra.mxu1 %v3141_v33  ;;  %v3137_v33 = vld [vmem:[%s3866_s3 + $0xf8] sm:$0xff]  }
 0x2ee   : > { %v1167_v26 = vmax.f32 %v1153_v21, %v1163_v25  ;;  %1179 = vrot.lane.b32.xlu1 %v1176_v22, %s3251_s21  ;;  %2885 = vmatprep.subr.bf16.mxu1 %v3489_v31  ;;  %v3134_v21 = vld [vmem:[%s3866_s3 + $0xe0] sm:$0xff]  }
 0x2f0   : > { %v1177_v27 = vrot.slane %v1167_v26, 7  ;;  %v3135_v26 = vld [vmem:[%s3866_s3 + $0xe8] sm:$0xff]  }
 0x2f1   : > { %2886 = vmatpush3.bf16.msra.mxu1 %v3143_v34 }
 0x2f2   : > { %1183 = vrot.lane.b32.xlu1 %v1177_v27, %s3251_s21  ;;  %v1178_v29 = vsel %vm1003_vm6, %v1176_v22, %v1177_v27  ;;  %2887 = vmatprep.subr.bf16.mxu1 %v3489_v31 }
 0x2f3   : > { %1181 = vrot.lane.b32.xlu0 %v1178_v29, %s3251_s21 }
 0x2f5   : > { %2888 = vmatpush3.bf16.msra.mxu1 %v3145_v35 }
 0x2f6   : > { %2889 = vmatprep.subr.bf16.mxu1 %v3489_v31 }
 0x2f9   : > { %2890 = vmatpush3.bf16.msra.mxu1 %v3147_v36 }
 0x2fa   : > { %2891 = vmatprep.subr.bf16.mxu1 %v3489_v31 }
 0x2fd   : > { %2892 = vmatpush3.bf16.msra.mxu1 %v3149_v37 }
 0x2fe   : > { %2917 = vmatprep.subr.bf16.mxu1 %v3489_v31 }
 0x360   : > { %v1180_v38 = vpop.permute.xlu1 %1179 }
 0x361   : > { %1188 = vst.msk [vmem:[#allocation3] sm:$0xfe] %vm1016_vm7, %v1180_v38 }
 0x362   : > { %1189 = vst.msk [vmem:[#allocation3 + $0x8] sm:$0xfe] %vm1018_vm8, %v1180_v38  ;;  %v3142_v38 = vld [vmem:[%s3866_s3 + $0x140] sm:$0xff]  }
 0x364   : > { %v1184_v39 = vpop.permute.xlu1 %1183 }
 0x365   : > { %1192 = vst.msk [vmem:[#allocation3 + $0x20] sm:$0x1] %vm1024_vm11, %v1184_v39  ;;  %v1182_v40 = vpop.permute.xlu0 %1181 }
 0x366   : > { %1193 = vst.msk [vmem:[#allocation3 + $0x28] sm:$0x1] %vm1026_vm12, %v1184_v39 }
 0x367   : > { %1190 = vst.msk [vmem:[#allocation3 + $0x10] sm:$0xff] %vm1020_vm9, %v1182_v40 }
 0x368   : > { %1191 = vst.msk [vmem:[#allocation3 + $0x18] sm:$0xff] %vm1022_vm10, %v1182_v40  ;;  %v1194_v42 = vld [vmem:[#allocation3] sm:$0xff]  ;;  %v3144_v40 = vld [vmem:[%s3866_s3 + $0x148] sm:$0xff]  }
 0x369   : > { %v1213_v41 = vld [vmem:[#allocation3 + $0x8] sm:$0xff]  ;;  %v1662_v49 = vld [vmem:[#allocation3] sm:$0xfe] }
 0x36a   : > { %v1663_v43 = vld [vmem:[#allocation3 + $0x8] sm:$0xfe]  ;;  %v2043_v11 = vld [vmem:[#allocation3] sm:$0xfc] }
 0x36b   : > { %v2044_v10 = vld [vmem:[#allocation3 + $0x8] sm:$0xfc]  ;;  %v1535_v24 = vld [vmem:[#allocation3] sm:$0xfe] }
 0x36c   : > { %v1666_v45 = vld [vmem:[#allocation3 + $0x20] sm:$0x1] }
 0x36d   : > { %v1667_v44 = vld [vmem:[#allocation3 + $0x28] sm:$0x1]  ;;  %v1670_v50 = vpack.c.bf16 %v1666_v45, %v1666_v45  ;;  %v2045_v6 = vld [vmem:[#allocation3 + $0x20] sm:$0x3] }
 0x36e   : > { %v3580_v47 = vld [vmem:[#allocation3 + $0x10] sm:$0xff]  ;;  %v1671_v48 = vpack.c.bf16 %v1667_v44, %v1667_v44  ;;  %v2046_v5 = vld [vmem:[#allocation3 + $0x28] sm:$0x3]  ;;  %v2049_v15 = vpack.c.bf16 %v2045_v6, %v2045_v6  ;;  %v1537_v27 = vld [vmem:[#allocation3 + $0x20] sm:$0x1] }
 0x36f   : > { %v1214_v46 = vld [vmem:[#allocation3 + $0x18] sm:$0xff]  ;;  %v1196_v52 = vpack.c.bf16 %v3580_v47, %v1194_v42  ;;  %v1668_v55 = vpack.c.bf16 %v3580_v47, %v1662_v49  ;;  %v1697_v58 = vshll.u32 %v1670_v50, 16  ;;  %v2050_v13 = vpack.c.bf16 %v2046_v5, %v2046_v5  ;;  %v3148_v42 = vld [vmem:[%s3866_s3 + $0x158] sm:$0xff]   ;;  %v3154_v45 = vld [vmem:[%s3866_s3 + $0x170] sm:$0xff]  }
 0x370   : > { %v1215_v51 = vpack.c.bf16 %v1214_v46, %v1213_v41  ;;  %v1669_v54 = vpack.c.bf16 %v1214_v46, %v1663_v43  ;;  %v1709_v57 = vshll.u32 %v1671_v48, 16  ;;  %v2048_v12 = vpack.c.bf16 %v1214_v46, %v2044_v10  ;;  %v3146_v41 = vld [vmem:[%s3866_s3 + $0x150] sm:$0xff]   ;;  %v3150_v43 = vld [vmem:[%s3866_s3 + $0x160] sm:$0xff]   ;;  %v3152_v44 = vld [vmem:[%s3866_s3 + $0x168] sm:$0xff]  }
 0x371   : > { %1235 = vrot.lane.b32.xlu0 %v1196_v52, %s3249_s16  ;;  %v1692_v0 = vshll.u32 %v1668_v55, 16  ;;  %2914 = vmatmul.mubr.bf16.vlgmr.msra.gmra.mrb[20].mxu0 %v1196_v52  ;;  %v1690_v61 = vshrl.u32 %v1668_v55, 16  ;;  %v1699_v4 = vrot.slane %v1697_v58, 1  ;;  %v2047_v14 = vpack.c.bf16 %v3580_v47, %v2043_v11  ;;  %v3156_v46 = vld [vmem:[%s3866_s3 + $0x178] sm:$0xff]   ;;  %v3151_v48 = vld [vmem:[%s3866_s3 + $0x80] sm:$0xff]   ;;  %v3155_v55 = vld [vmem:[%s3866_s3 + $0x90] sm:$0xff]  }
 0x372   : > { %1237 = vrot.lane.b32.xlu1 %v1215_v51, %s3249_s16  ;;  %v1704_v56 = vshll.u32 %v1669_v54, 16  ;;  %2938 = vmatpush3.bf16.msra.mxu0 %v3130_v53  ;;  %v1702_v60 = vshrl.u32 %v1669_v54, 16  ;;  %v1711_v3 = vrot.slane %v1709_v57, 1  ;;  %v2075_v17 = vrot.slane %v2048_v12, 1  ;;  %v3158_v58 = vld [vmem:[%s3866_s3 + $0x1c0] sm:$0xff]   ;;  %v3165_v5 = vld [vmem:[%s3866_s3 + $0xb8] sm:$0xff]  }
 0x373   : > { %v1694_v1 = vrot.slane %v1692_v0, 1  ;;  %2953 = vmatprep.mubr.msk.bf16.mxu0 %vm3247_vm0, %v3489_v31  ;;  %2939 = vmatprep.subr.bf16.mxu0 %v3489_v31  ;;  %v2076_v18 = vrot.slane %v2050_v13, 1  ;;  %v2072_v19 = vrot.slane %v2047_v14, 1  ;;  %v2073_v20 = vrot.slane %v2049_v15, 1  ;;  %v3157_v0 = vld [vmem:[%s3866_s3 + $0x98] sm:$0xff]   ;;  %v3166_v6 = vld [vmem:[%s3866_s3 + $0x1e0] sm:$0xff]  }
 0x374   : > { %v1706_v62 = vrot.slane %v1704_v56, 1  ;;  %v1538_v25 = vpack.c.bf16 %v3580_v47, %v1535_v24  ;;  %v1539_v30 = vpack.c.bf16 %v1537_v27, %v1537_v27  ;;  %v3169_v10 = vld [vmem:[%s3866_s3 + $0x108] sm:$0xff]   ;;  %v3170_v11 = vld [vmem:[%s3866_s3 + $0x1f0] sm:$0xff]   ;;  %v3172_v13 = vld [vmem:[%s3866_s3 + $0x1f8] sm:$0xff]  }
 0x375   : > { %1437 = vrot.lane.b32.xlu0 %v1196_v52, %s3252_s22  ;;  %v1695_v63 = vor.u32 %v1694_v1, %v1690_v61  ;;  %v2077_v22 = vsel %vm1070_vm13, %v2075_v17, %v2076_v18  ;;  %v2074_v23 = vsel %vm1070_vm13, %v2072_v19, %v2073_v20  ;;  %v3153_v52 = vld [vmem:[%s3866_s3 + $0x88] sm:$0xff]   ;;  %v3159_v61 = vld [vmem:[%s3866_s3 + $0xa0] sm:$0xff]   ;;  %v3171_v12 = vld [vmem:[%s3866_s3 + $0x110] sm:$0xff]  }
 0x376   : > { %1439 = vrot.lane.b32.xlu1 %v1215_v51, %s3252_s22  ;;  %v1707_v2 = vor.u32 %v1706_v62, %v1702_v60  ;;  %2940 = vmatpush3.bf16.msra.mxu0 %v3131_v59  ;;  %v1561_v29 = vshll.u32 %v1538_v25, 16  ;;  %v1559_v34 = vshrl.u32 %v1538_v25, 16  ;;  %v1566_v35 = vshll.u32 %v1539_v30, 16  ;;  %v3160_v1 = vld [vmem:[%s3866_s3 + $0x1c8] sm:$0xff]   ;;  %v3174_v18 = vld [vmem:[%s3866_s3 + $0x120] sm:$0xff]   ;;  %v3176_v20 = vld [vmem:[%s3866_s3 + $0x130] sm:$0xff]  }
 0x377   : > { %v1700_v9 = vsel %vm1557_vm2, %v1695_v63, %v1699_v4  ;;  %2941 = vmatprep.subr.bf16.mxu0 %v3489_v31  ;;  %v3163_v63 = vld [vmem:[%s3866_s3 + $0xb0] sm:$0xff]   ;;  %v3164_v4 = vld [vmem:[%s3866_s3 + $0x1d8] sm:$0xff]   ;;  %v3175_v19 = vld [vmem:[%s3866_s3 + $0x128] sm:$0xff]  }
 0x378   : > { %v1712_v8 = vsel %vm1557_vm2, %v1707_v2, %v1711_v3  ;;  %v1563_v32 = vrot.slane %v1561_v29, 1  ;;  %v1568_v37 = vrot.slane %v1566_v35, 1  ;;  %v3161_v2 = vld [vmem:[%s3866_s3 + $0xa8] sm:$0xff]   ;;  %v3162_v3 = vld [vmem:[%s3866_s3 + $0x1d0] sm:$0xff]   ;;  %v3182_v27 = vld [vmem:[%s3866_s3 + $0x1a0] sm:$0xff]  }
 0x379   : > { %1713 = vrot.lane.b32.xlu0 %v1700_v9, %s3249_s16  ;;  %v3179_v24 = vld [vmem:[%s3866_s3 + $0x188] sm:$0xff]   ;;  %v3180_v25 = vld [vmem:[%s3866_s3 + $0x190] sm:$0xff]   ;;  %v3185_v35 = vld [vmem:[%s3866_s3 + $0x1b8] sm:$0xff]  }
 0x37a   : > { %1715 = vrot.lane.b32.xlu1 %v1712_v8, %s3249_s16  ;;  %2942 = vmatpush3.bf16.msra.mxu0 %v3132_v7  ;;  %v1564_v36 = vor.u32 %v1563_v32, %v1559_v34  ;;  %v3167_v7 = vld [vmem:[%s3866_s3 + $0x100] sm:$0xff]   ;;  %v3183_v29 = vld [vmem:[%s3866_s3 + $0x1a8] sm:$0xff]   ;;  %v3184_v30 = vld [vmem:[%s3866_s3 + $0x1b0] sm:$0xff]  }
 0x37b   : > { %2943 = vmatprep.subr.bf16.mxu0 %v3489_v31  ;;  %v1924_v32 = vld [vmem:[#allocation3] sm:$0xfc] }
 0x37c   : > { %v1569_v39 = vsel %vm1557_vm2, %v1564_v36, %v1568_v37 }
 0x37d   : > { %1827 = vrot.lane.b32.xlu0 %v1700_v9, %s3252_s22 }
 0x37e   : > { %1829 = vrot.lane.b32.xlu1 %v1712_v8, %s3252_s22  ;;  %2944 = vmatpush3.bf16.msra.mxu0 %v3133_v16  ;;  %v3168_v8 = vld [vmem:[%s3866_s3 + $0x1e8] sm:$0xff]   ;;  %v3173_v16 = vld [vmem:[%s3866_s3 + $0x118] sm:$0xff]  }
 0x37f   : > { %2945 = vmatprep.subr.bf16.mxu0 %v3489_v31 }
 0x381   : > { %2078 = vrot.lane.b32.xlu0 %v2074_v23, %s3249_s16 }
 0x382   : > { %2080 = vrot.lane.b32.xlu1 %v2077_v22, %s3249_s16  ;;  %2946 = vmatpush3.bf16.msra.mxu0 %v3134_v21  ;;  %v3177_v21 = vld [vmem:[%s3866_s3 + $0x138] sm:$0xff]  }
 0x383   : > { %2947 = vmatprep.subr.bf16.mxu0 %v3489_v31 }
 0x385   : > { %2192 = vrot.lane.b32.xlu0 %v2074_v23, %s3252_s22 }
 0x386   : > { %2194 = vrot.lane.b32.xlu1 %v2077_v22, %s3252_s22  ;;  %2948 = vmatpush3.bf16.msra.mxu0 %v3135_v26  ;;  %v3178_v22 = vld [vmem:[%s3866_s3 + $0x180] sm:$0xff]   ;;  %v3181_v26 = vld [vmem:[%s3866_s3 + $0x198] sm:$0xff]  }
 0x387   : > { %2949 = vmatprep.subr.bf16.mxu0 %v3489_v31 }
 0x38a   : > { %2950 = vmatpush3.bf16.msra.mxu0 %v3136_v28  ;;  %v1925_v28 = vld [vmem:[#allocation3 + $0x20] sm:$0x3] }
 0x38b   : > { %2951 = vmatprep.subr.bf16.mxu0 %v3489_v31  ;;  %v1927_v34 = vpack.c.bf16 %v1925_v28, %v1925_v28 }
 0x38d   : > { %v1949_v37 = vrot.slane %v1927_v34, 1 }
 0x38e   : > { %2952 = vmatpush3.bf16.msra.mxu0 %v3137_v33  ;;  %v1926_v33 = vpack.c.bf16 %v3580_v47, %v1924_v32 }
 0x38f   : > { %2977 = vmatprep.subr.bf16.mxu0 %v3489_v31 }
 0x390   : > { %v1948_v36 = vrot.slane %v1926_v33, 1  ;;  %v2637_v33 = vld [vmem:[%s3867_s4] ss:$0 sm:$0xff] }
 0x391   : > { %2954 = vmatmul.mubr.bf16.vlgmr.msra.gmra.mrb[24].mxu0 %v1569_v39 }
 0x392   : > { %2978 = vmatpush3.bf16.msra.mxu0 %v3142_v38  ;;  %2993 = vmatprep.mubr.msk.bf16.mxu0 %vm3247_vm0, %v3489_v31  ;;  %v3186_v38 = vld [vmem:[%s3866_s3 + $0x200] sm:$0xff]   ;;  %v1950_v39 = vsel %vm1070_vm13, %v1948_v36, %v1949_v37 }
 0x393   : > { %2979 = vmatprep.subr.bf16.mxu0 %v3489_v31 }
 0x396   : > { %2980 = vmatpush3.bf16.msra.mxu0 %v3144_v40 }
 0x397   : > { %2981 = vmatprep.subr.bf16.mxu0 %v3489_v31 }
 0x39a   : > { %2982 = vmatpush3.bf16.msra.mxu0 %v3146_v41  ;;  %v3187_v41 = vld [vmem:[%s3866_s3 + $0x208] sm:$0xff]  }
 0x39b   : > { %2983 = vmatprep.subr.bf16.mxu0 %v3489_v31 }
 0x39e   : > { %2984 = vmatpush3.bf16.msra.mxu0 %v3148_v42 }
 0x39f   : > { %2985 = vmatprep.subr.bf16.mxu0 %v3489_v31 }
 0x3a2   : > { %2986 = vmatpush3.bf16.msra.mxu0 %v3150_v43 }
 0x3a3   : > { %2987 = vmatprep.subr.bf16.mxu0 %v3489_v31 }
 0x3a6   : > { %2988 = vmatpush3.bf16.msra.mxu0 %v3152_v44  ;;  %v3188_v44 = vld [vmem:[%s3866_s3 + $0x210] sm:$0xff]  }
 0x3a7   : > { %2989 = vmatprep.subr.bf16.mxu0 %v3489_v31 }
 0x3aa   : > { %2990 = vmatpush3.bf16.msra.mxu0 %v3154_v45  ;;  %v3189_v45 = vld [vmem:[%s3866_s3 + $0x218] sm:$0xff]  }
 0x3ab   : > { %2991 = vmatprep.subr.bf16.mxu0 %v3489_v31 }
 0x3ae   : > { %2992 = vmatpush3.bf16.msra.mxu0 %v3156_v46  ;;  %v3190_v46 = vld [vmem:[%s3866_s3 + $0x220] sm:$0xff]  }
 0x3af   : > { %3017 = vmatprep.subr.bf16.mxu0 %v3489_v31 }
 0x3e3   : > { %v1236_v49 = vpop.permute.xlu0 %1235 }
 0x3e4   : > { %v1238_v50 = vpop.permute.xlu1 %1237 }
 0x3e5   : > { %v1240_v51 = vsel %vm1044_vm15, %v1236_v49, %v1238_v50  ;;  %v3192_v49 = vld [vmem:[%s3866_s3 + $0x230] sm:$0xff]   ;;  %v3193_v50 = vld [vmem:[%s3866_s3 + $0x238] sm:$0xff]  }
 0x3e6   : > { %2894 = vmatmul.mubr.bf16.vlgmr.msra.gmra.mrb[16].mxu1 %v1240_v51 }
 0x3e7   : > { %2918 = vmatpush3.bf16.msra.mxu1 %v3151_v48  ;;  %2933 = vmatprep.mubr.msk.bf16.mxu1 %vm3247_vm0, %v3489_v31  ;;  %v1438_v53 = vpop.permute.xlu0 %1437  ;;  %v3191_v48 = vld [vmem:[%s3866_s3 + $0x228] sm:$0xff]  }
 0x3e8   : > { %v1440_v54 = vpop.permute.xlu1 %1439  ;;  %2919 = vmatprep.subr.bf16.mxu1 %v3489_v31 }
 0x3e9   : > { %v1442_v9 = vsel %vm1059_vm1, %v1438_v53, %v1440_v54 }
 0x3eb   : > { %2920 = vmatpush3.bf16.msra.mxu1 %v3153_v52  ;;  %v3684_v56 = vpop.permute.xlu0 %1713 }
 0x3ec   : > { %v3686_v57 = vpop.permute.xlu1 %1715  ;;  %2921 = vmatprep.subr.bf16.mxu1 %v3489_v31 }
 0x3ed   : > { %v1717_v23 = vsel %vm1044_vm15, %v3684_v56, %v3686_v57 }
 0x3ef   : > { %2922 = vmatpush3.bf16.msra.mxu1 %v3155_v55  ;;  %v1828_v59 = vpop.permute.xlu0 %1827 }
 0x3f0   : > { %v1830_v60 = vpop.permute.xlu1 %1829  ;;  %2923 = vmatprep.subr.bf16.mxu1 %v3489_v31 }
 0x3f1   : > { %v1831_v62 = vsel %vm1059_vm1, %v1828_v59, %v1830_v60 }
 0x3f2   : > { %2994 = vmatmul.mubr.bf16.vlgmr.msra.gmra.mrb[28].mxu0 %v1831_v62 }
 0x3f3   : > { %2924 = vmatpush3.bf16.msra.mxu1 %v3157_v0  ;;  %3018 = vmatpush3.bf16.msra.mxu0 %v3158_v58  ;;  %v2079_v14 = vpop.permute.xlu0 %2078 }
 0x3f4   : > { %2925 = vmatprep.subr.bf16.mxu1 %v3489_v31  ;;  %3019 = vmatprep.subr.bf16.mxu0 %v3489_v31  ;;  %v2081_v15 = vpop.permute.xlu1 %2080 }
 0x3f5   : > { %3033 = vmatprep.mubr.msk.bf16.mxu0 %vm3247_vm0, %v3489_v31  ;;  %v2082_v17 = vsel %vm1044_vm15, %v2079_v14, %v2081_v15 }
 0x3f7   : > { %2926 = vmatpush3.bf16.msra.mxu1 %v3159_v61  ;;  %3020 = vmatpush3.bf16.msra.mxu0 %v3160_v1  ;;  %v2193_v51 = vpop.permute.xlu0 %2192 }
 0x3f8   : > { %2927 = vmatprep.subr.bf16.mxu1 %v3489_v31  ;;  %3021 = vmatprep.subr.bf16.mxu0 %v3489_v31  ;;  %v2195_v52 = vpop.permute.xlu1 %2194 }
 0x3f9   : > { %v2196_v53 = vsel %vm1059_vm1, %v2193_v51, %v2195_v52 }
 0x3fb   : > { %2928 = vmatpush3.bf16.msra.mxu1 %v3161_v2  ;;  %3022 = vmatpush3.bf16.msra.mxu0 %v3162_v3 }
 0x3fc   : > { %2929 = vmatprep.subr.bf16.mxu1 %v3489_v31  ;;  %3023 = vmatprep.subr.bf16.mxu0 %v3489_v31 }
 0x3ff   : > { %2930 = vmatpush3.bf16.msra.mxu1 %v3163_v63  ;;  %3024 = vmatpush3.bf16.msra.mxu0 %v3164_v4 }
 0x400   : > { %2931 = vmatprep.subr.bf16.mxu1 %v3489_v31  ;;  %3025 = vmatprep.subr.bf16.mxu0 %v3489_v31 }
 0x403   : > { %2932 = vmatpush3.bf16.msra.mxu1 %v3165_v5  ;;  %3026 = vmatpush3.bf16.msra.mxu0 %v3166_v6 }
 0x404   : > { %2957 = vmatprep.subr.bf16.mxu1 %v3489_v31  ;;  %3027 = vmatprep.subr.bf16.mxu0 %v3489_v31 }
 0x406   : > { %2934 = vmatmul.mubr.bf16.vlgmr.msra.gmra.mrb[20].mxu1 %v1442_v9 }
 0x407   : > { %2958 = vmatpush3.bf16.msra.mxu1 %v3167_v7  ;;  %3028 = vmatpush3.bf16.msra.mxu0 %v3168_v8 }
 0x408   : > { %2959 = vmatprep.subr.bf16.mxu1 %v3489_v31  ;;  %3029 = vmatprep.subr.bf16.mxu0 %v3489_v31 }
 0x409   : > { %2973 = vmatprep.mubr.msk.bf16.mxu1 %vm3247_vm0, %v3489_v31 }
 0x40b   : > { %2960 = vmatpush3.bf16.msra.mxu1 %v3169_v10  ;;  %3030 = vmatpush3.bf16.msra.mxu0 %v3170_v11 }
 0x40c   : > { %2961 = vmatprep.subr.bf16.mxu1 %v3489_v31  ;;  %3031 = vmatprep.subr.bf16.mxu0 %v3489_v31 }
 0x40f   : > { %2962 = vmatpush3.bf16.msra.mxu1 %v3171_v12  ;;  %3032 = vmatpush3.bf16.msra.mxu0 %v3172_v13 }
 0x410   : > { %2963 = vmatprep.subr.bf16.mxu1 %v3489_v31 }
 0x412   : > { %3034 = vmatmul.mubr.bf16.vlgmr.msra.gmra.mrb[32].mxu0 %v2082_v17 }
 0x413   : > { %2964 = vmatpush3.bf16.msra.mxu1 %v3173_v16 }
 0x414   : > { %2965 = vmatprep.subr.bf16.mxu1 %v3489_v31 }
 0x417   : > { %2966 = vmatpush3.bf16.msra.mxu1 %v3174_v18 }
 0x418   : > { %2967 = vmatprep.subr.bf16.mxu1 %v3489_v31 }
 0x41b   : > { %2968 = vmatpush3.bf16.msra.mxu1 %v3175_v19 }
 0x41c   : > { %2969 = vmatprep.subr.bf16.mxu1 %v3489_v31 }
 0x41f   : > { %2970 = vmatpush3.bf16.msra.mxu1 %v3176_v20 }
 0x420   : > { %2971 = vmatprep.subr.bf16.mxu1 %v3489_v31 }
 0x423   : > { %2972 = vmatpush3.bf16.msra.mxu1 %v3177_v21 }
 0x424   : > { %2997 = vmatprep.subr.bf16.mxu1 %v3489_v31 }
 0x426   : > { %2974 = vmatmul.mubr.bf16.vlgmr.msra.gmra.mrb[24].mxu1 %v1717_v23 }
 0x427   : > { %2998 = vmatpush3.bf16.msra.mxu1 %v3178_v22  ;;  %3013 = vmatprep.mubr.msk.bf16.mxu1 %vm3247_vm0, %v3489_v31 }
 0x428   : > { %2999 = vmatprep.subr.bf16.mxu1 %v3489_v31 }
 0x42b   : > { %3000 = vmatpush3.bf16.msra.mxu1 %v3179_v24 }
 0x42c   : > { %3001 = vmatprep.subr.bf16.mxu1 %v3489_v31 }
 0x42f   : > { %3002 = vmatpush3.bf16.msra.mxu1 %v3180_v25 }
 0x430   : > { %3003 = vmatprep.subr.bf16.mxu1 %v3489_v31 }
 0x433   : > { %3004 = vmatpush3.bf16.msra.mxu1 %v3181_v26 }
 0x434   : > { %3005 = vmatprep.subr.bf16.mxu1 %v3489_v31 }
 0x437   : > { %3006 = vmatpush3.bf16.msra.mxu1 %v3182_v27 }
 0x438   : > { %3007 = vmatprep.subr.bf16.mxu1 %v3489_v31 }
 0x43b   : > { %3008 = vmatpush3.bf16.msra.mxu1 %v3183_v29 }
 0x43c   : > { %3009 = vmatprep.subr.bf16.mxu1 %v3489_v31 }
 0x43f   : > { %3010 = vmatpush3.bf16.msra.mxu1 %v3184_v30 }
 0x440   : > { %3011 = vmatprep.subr.bf16.mxu1 %v3489_v31 }
 0x443   : > { %3012 = vmatpush3.bf16.msra.mxu1 %v3185_v35 }
 0x444   : > { %3037 = vmatprep.subr.bf16.mxu1 %v3489_v31  ;;  %v1413_v47 = vpop.f32.mrb[20].mxu0 }
 0x445   : > { %v2915_v40 = vpop.f32.mrb[21].mxu0 }
 0x446   : > { %3014 = vmatmul.mubr.bf16.vlgmr.msra.gmra.mrb[28].mxu1 %v1950_v39  ;;  %v1416_v42 = vpop.f32.mrb[22].mxu0 }
 0x447   : > { %3038 = vmatpush3.bf16.msra.mxu1 %v3186_v38  ;;  %3053 = vmatprep.mubr.msk.bf16.mxu1 %vm3247_vm0, %v3489_v31  ;;  %v2916_v43 = vpop.f32.mrb[23].mxu0 }
 0x448   : > { %3039 = vmatprep.subr.bf16.mxu1 %v3489_v31 }
 0x44b   : > { %3040 = vmatpush3.bf16.msra.mxu1 %v3187_v41 }
 0x44c   : > { %3041 = vmatprep.subr.bf16.mxu1 %v3489_v31 }
 0x44f   : > { %3042 = vmatpush3.bf16.msra.mxu1 %v3188_v44 }
 0x450   : > { %3043 = vmatprep.subr.bf16.mxu1 %v3489_v31 }
 0x453   : > { %3044 = vmatpush3.bf16.msra.mxu1 %v3189_v45 }
 0x454   : > { %3045 = vmatprep.subr.bf16.mxu1 %v3489_v31 }
 0x457   : > { %3046 = vmatpush3.bf16.msra.mxu1 %v3190_v46 }
 0x458   : > { %3047 = vmatprep.subr.bf16.mxu1 %v3489_v31 }
 0x45b   : > { %3048 = vmatpush3.bf16.msra.mxu1 %v3191_v48 }
 0x45c   : > { %3049 = vmatprep.subr.bf16.mxu1 %v3489_v31 }
 0x45f   : > { %3050 = vmatpush3.bf16.msra.mxu1 %v3192_v49 }
 0x460   : > { %3051 = vmatprep.subr.bf16.mxu1 %v3489_v31 }
 0x463   : > { %3052 = vmatpush3.bf16.msra.mxu1 %v3193_v50 }
 0x464   : > { %v1653_v54 = vpop.f32.mrb[24].mxu0 }
 0x465   : > { %v2955_v55 = vpop.f32.mrb[25].mxu0 }
 0x466   : > { %3054 = vmatmul.mubr.bf16.vlgmr.msra.gmra.mrb[32].mxu1 %v2196_v53  ;;  %v1656_v56 = vpop.f32.mrb[26].mxu0 }
 0x467   : > { %v2956_v57 = vpop.f32.mrb[27].mxu0 }
 0x4b9   : > { %v1324_v0 = vpop.f32.mrb[16].mxu1 }
 0x4ba   : > { %v1414_v58 = vadd.f32 %v1413_v47, %v1324_v0  ;;  %v2895_v59 = vpop.f32.mrb[17].mxu1 }
 0x4bb   : > { %v1327_v60 = vpop.f32.mrb[18].mxu1 }
 0x4bc   : > { %v1417_v62 = vadd.f32 %v1416_v42, %v1327_v60  ;;  %v2896_v61 = vpop.f32.mrb[19].mxu1 }
 0x4c5   : > { %v1915_v1 = vpop.f32.mrb[28].mxu0 }
 0x4c6   : > { %v2995_v2 = vpop.f32.mrb[29].mxu0 }
 0x4c7   : > { %v1918_v3 = vpop.f32.mrb[30].mxu0 }
 0x4c8   : > { %v2996_v31 = vpop.f32.mrb[31].mxu0 }
 0x4d9   : > { %v1526_v63 = vpop.f32.mrb[20].mxu1 }
 0x4da   : > { %v1533_v4 = vadd.f32 %v1526_v63, %v1414_v58  ;;  %v2935_v5 = vpop.f32.mrb[21].mxu1 }
 0x4db   : > { %v1529_v6 = vpop.f32.mrb[22].mxu1 }
 0x4dc   : > { %v1534_v7 = vadd.f32 %v1529_v6, %v1417_v62  ;;  %v2936_v8 = vpop.f32.mrb[23].mxu1  ;;  %v1660_v9 = vadd.f32 %v1653_v54, %v1533_v4 }
 0x4de   : > { %v1661_v10 = vadd.f32 %v1656_v56, %v1534_v7 }
 0x4e5   : > { %v2166_v11 = vpop.f32.mrb[32].mxu0 }
 0x4e6   : > { %v3035_v12 = vpop.f32.mrb[33].mxu0 }
 0x4e7   : > { %v2169_v13 = vpop.f32.mrb[34].mxu0 }
 0x4e8   : > { %v3036_v14 = vpop.f32.mrb[35].mxu0 }
 0x4f9   : > { %v1801_v15 = vpop.f32.mrb[24].mxu1 }
 0x4fa   : > { %v1808_v16 = vadd.f32 %v1801_v15, %v1660_v9  ;;  %v2975_v17 = vpop.f32.mrb[25].mxu1 }
 0x4fb   : > { %v1804_v18 = vpop.f32.mrb[26].mxu1 }
 0x4fc   : > { %v1809_v19 = vadd.f32 %v1804_v18, %v1661_v10  ;;  %v2976_v20 = vpop.f32.mrb[27].mxu1  ;;  %v1922_v21 = vadd.f32 %v1915_v1, %v1808_v16 }
 0x4fe   : > { %v1923_v22 = vadd.f32 %v1918_v3, %v1809_v19 }
 0x519   : > { %v2034_v23 = vpop.f32.mrb[28].mxu1 }
 0x51a   : > { %v2041_v24 = vadd.f32 %v2034_v23, %v1922_v21  ;;  %v3015_v25 = vpop.f32.mrb[29].mxu1 }
 0x51b   : > { %v2037_v26 = vpop.f32.mrb[30].mxu1 }
 0x51c   : > { %v2042_v27 = vadd.f32 %v2037_v26, %v1923_v22  ;;  %v3016_v29 = vpop.f32.mrb[31].mxu1  ;;  %v2173_v28 = vadd.f32 %v2166_v11, %v2041_v24 }
 0x51e   : > { %v2174_v30 = vadd.f32 %v2169_v13, %v2042_v27 }
 0x539   : > { %v2280_v32 = vpop.f32.mrb[32].mxu1 }
 0x53a   : > { %v2287_v34 = vadd.f32 %v2280_v32, %v2173_v28  ;;  %v3055_v35 = vpop.f32.mrb[33].mxu1 }
 0x53b   : > { %v2283_v36 = vpop.f32.mrb[34].mxu1 }
 0x53c   : > { %v2296_v37 = vadd.f32 %v2637_v33, %v2287_v34  ;;  %v2288_v38 = vadd.f32 %v2283_v36, %v2174_v30  ;;  %v3056_v39 = vpop.f32.mrb[35].mxu1 }
 0x53e   : > { %v2300_v47 = vmin.f32 %v2296_v37, 0.0  ;;  %v2297_v40 = vadd.f32 %v2637_v33, %v2288_v38  ;;  %vm2298_vm0 = vcmp.gt.f32.partialorder %v2296_v37, 0.0 }
 0x540   : > { %v2302_v41 = vmul.f32 1.442695, %v2300_v47  ;;  %v2301_v42 = vmin.f32 %v2297_v40, 0.0  ;;  %vm2299_vm3 = vcmp.gt.f32.partialorder %v2297_v40, 0.0 }
 0x542   : > { %3198 = vpow2.f32 %v2302_v41  ;;  %v2304_v43 = vmul.f32 1.442695, %v2301_v42 }
 0x544   : > { %3200 = vpow2.f32 %v2304_v43 }
 0x54c   : > { %v3199_v44 = vpop.eup %3198 }
 0x54d   : > { %v2638_v45 = vadd.f32 -1.0, %v3199_v44 }
 0x54e   : > { %v3201_v46 = vpop.eup %3200 }
 0x54f   : > { %v2308_v48 = vsel %vm2298_vm0, %v2296_v37, %v2638_v45  ;;  %v2639_v49 = vadd.f32 -1.0, %v3201_v46 }
 0x550   : > { %2310 = vst [vmem:[%s239_s11] sm:$0xff] %v2308_v48 }
 0x551   : > { %v2309_v50 = vsel %vm2299_vm3, %v2297_v40, %v2639_v49 }
 0x552   : > { %2311 = vst [vmem:[%s239_s11 + $0x8] sm:$0xff] %v2309_v50 }
 0x553 PF: > { %s16_s18 = sadd.s32 1, %s3241_s18  }
 0x554   : > { %p13_p3 = scmp.ge.s32.totalorder %s16_s18, 4  }
 0x556   :  { %15 = sbr.rel (!%p13_p3) target bundleno = 1 (0x1), region = 91 }
 0x55d   :  { %2333 = vsyncpa [#allocation5], 1 }
 0x55e   :  { %2335 = vsyncpa [#allocation5 + $0x1], 1 }

</bundles_post_ra>
